<compile_context>
chip_gen: v5e
topology: v5e:2x2
jax: 0.10.0
libtpu: 0.0.40
codegen_flags: <defaults>
</compile_context>

<pallas_src>
import jax
import jax.numpy as jnp
from jax.experimental import pallas as pl
from jax.experimental.pallas import tpu as pltpu


def _log_softmax_last(x):
    m = jnp.max(x, axis=-1, keepdims=True)
    z = x - m
    return z - jnp.log(jnp.sum(jnp.exp(z), axis=-1, keepdims=True))


def fused_lstm_classifier_kernel(x_ref, wih_ref, whh_ref, b_ref,
                                 wtag_ref, btag_ref, wpd_ref, bpd_ref,
                                 tag_ref, pd_ref):
    """One batch tile of the whole forward pass, VMEM-resident.

    x_ref:    (Bb, T, E)   batch-first embeddings (one batch tile)
    wih_ref:  (E, 4H)      LSTM input weights, pre-transposed, PyTorch gate order i,f,g,o
    whh_ref:  (H, 4H)      LSTM recurrent weights, pre-transposed
    b_ref:    (1, 4H)      b_ih + b_hh
    wtag_ref: (H, L), btag_ref: (1, L)
    wpd_ref:  (H, 3),  bpd_ref: (1, 3)
    tag_ref:  (Bb, L)      log-softmax tag scores (from h_T)
    pd_ref:   (Bb, T, 3)   log-softmax per-token scores
    """
    Bb, T, E = x_ref.shape
    H = whh_ref.shape[0]

    xv = x_ref[...]

    # ---- Hoisted, time-major input projection (one matmul for all timesteps) ----
    # The T small extracts below only depend on x (not on h), so they sit off the
    # serial recurrence chain; gx[t] in the loop is then a free leading-axis index.
    xt = jnp.stack([xv[:, t, :] for t in range(T)], axis=0)           # (T, Bb, E)
    gx = jnp.dot(xt.reshape(T * Bb, E), wih_ref[...],
                 preferred_element_type=jnp.float32) + b_ref[...]     # (T*Bb, 4H)
    gx = gx.reshape(T, Bb, 4 * H)                                      # time-major

    whh = whh_ref[...]

    h = jnp.zeros((Bb, H), jnp.float32)
    c = jnp.zeros((Bb, H), jnp.float32)
    hs = []

    # ---- Serial recurrence, fully unrolled (T static & small). Only h @ W_hh and the
    # cell elementwise update remain on the critical path; no per-step head matmuls,
    # exp/log chains or masked stores. ----
    for t in range(T):
        gates = gx[t] + jnp.dot(h, whh, preferred_element_type=jnp.float32)  # (Bb, 4H)
        i = jax.nn.sigmoid(gates[:, 0:H])
        f = jax.nn.sigmoid(gates[:, H:2 * H])
        g = jnp.tanh(gates[:, 2 * H:3 * H])
        o = jax.nn.sigmoid(gates[:, 3 * H:4 * H])
        c = f * c + i * g
        h = o * jnp.tanh(c)
        hs.append(h)
    # TODO(synk): for T beyond ~16-32, switch the unrolled Python loop to
    # lax.fori_loop(..., unroll=...) with a (T, Bb, H) VMEM scratch to bound vreg
    # pressure / compile time (not needed at T=8).

    # ---- pd head once over all timesteps: one matmul, one log-softmax, one slab store
    # directly in the module's (B, T, 3) layout. ----
    h_all = jnp.concatenate([ht[:, None, :] for ht in hs], axis=1)            # (Bb, T, H)
    pd = jnp.dot(h_all.reshape(Bb * T, H), wpd_ref[...],
                 preferred_element_type=jnp.float32) + bpd_ref[...]           # (Bb*T, 3)
    pd_ref[...] = _log_softmax_last(pd).reshape(Bb, T, 3)

    # ---- tag head on the final hidden state (== hn[0] in the PyTorch module) ----
    tag = jnp.dot(h, wtag_ref[...], preferred_element_type=jnp.float32) + btag_ref[...]
    tag_ref[...] = _log_softmax_last(tag)


@jax.jit
def lstm_classifier_forward(embeddings, params):
    """embeddings: (B, T, E) float32, batch_first — same as the PyTorch module.

    Weight contract: LSTM/Linear weights must be PRE-TRANSPOSED to (in, out) layout
    ((E,4H), (H,4H), (H,L), (H,3)) with PyTorch gate order i,f,g,o; passing native
    PyTorch (out, in) layout will give silently wrong results.
    """
    B, T, E = embeddings.shape
    H = params['w_hh'].shape[0]
    L = params['w_tag'].shape[1]

    bias = (params['b_ih'] + params['b_hh']).reshape(1, 4 * H)
    btag = params['b_tag'].reshape(1, L)
    bpd = params['b_pd'].reshape(1, 3)

    # Batch tiling: one grid step per batch tile. At the demo size this is a single
    # step; at realistic B the "parallel" axis lets v7x's two TensorCores split the
    # batch and BlockSpec double-buffering hides the per-tile HBM traffic behind the
    # recurrence of the previous tile. Tile only when it splits on the sublane granule.
    if B > 128 and B % 128 == 0:
        bb = 128
    else:
        bb = B
    grid = (B // bb,)

    def w_spec(shape):
        # Full-array block with a constant index_map -> weight stays VMEM-resident
        # across grid steps (no re-DMA).
        return pl.BlockSpec(shape, lambda b: (0,) * len(shape))

    tag_scores, pd_scores = pl.pallas_call(
        fused_lstm_classifier_kernel,
        out_shape=(jax.ShapeDtypeStruct((B, L), jnp.float32),
                   jax.ShapeDtypeStruct((B, T, 3), jnp.float32)),
        grid=grid,
        in_specs=[
            pl.BlockSpec((bb, T, E), lambda b: (b, 0, 0)),   # x: tiled over batch
            w_spec((E, 4 * H)),                              # W_ih
            w_spec((H, 4 * H)),                              # W_hh
            w_spec((1, 4 * H)),                              # bias
            w_spec((H, L)),                                  # hidden2tag.weight^T
            w_spec((1, L)),                                  # hidden2tag.bias
            w_spec((H, 3)),                                  # hidden2pd.weight^T
            w_spec((1, 3)),                                  # hidden2pd.bias
        ],
        out_specs=(pl.BlockSpec((bb, L), lambda b: (b, 0)),
                   pl.BlockSpec((bb, T, 3), lambda b: (b, 0, 0))),
        compiler_params=pltpu.CompilerParams(
            dimension_semantics=("parallel",),
            # Explicit VMEM budget (tiny here). At production sizes the hoisted
            # (T*Bb, 4H) gx buffer must be budgeted against v7x's 64 MiB: chunk the
            # projection over T/B or hold gx in bf16 before growing these shapes.
            vmem_limit_bytes=32 * 1024 * 1024,
        ),
    )(embeddings, params['w_ih'], params['w_hh'], bias,
      params['w_tag'], btag, params['w_pd'], bpd)

    return tag_scores, pd_scores


if __name__ == "__main__":
    # Small shapes consistent with the module's forward:
    B, T, E, H, L = 2, 8, 16, 32, 5   # batch, seq, embedding_dim, hidden_dim, label_size

    key = jax.random.PRNGKey(0)
    keys = jax.random.split(key, 9)
    k = float(1.0 / (H ** 0.5))       # PyTorch default LSTM/Linear init scale

    params = {
        # LSTM weights stored pre-transposed for (x @ W) layout, PyTorch gate order i,f,g,o:
        'w_ih': jax.random.uniform(keys[0], (E, 4 * H), jnp.float32, -k, k),
        'w_hh': jax.random.uniform(keys[1], (H, 4 * H), jnp.float32, -k, k),
        'b_ih': jax.random.uniform(keys[2], (4 * H,), jnp.float32, -k, k),
        'b_hh': jax.random.uniform(keys[3], (4 * H,), jnp.float32, -k, k),
        # hidden2tag: (H, label_size)
        'w_tag': jax.random.uniform(keys[4], (H, L), jnp.float32, -k, k),
        'b_tag': jax.random.uniform(keys[5], (L,), jnp.float32, -k, k),
        # hidden2pd: (H, 3)
        'w_pd': jax.random.uniform(keys[6], (H, 3), jnp.float32, -k, k),
        'b_pd': jax.random.uniform(keys[7], (3,), jnp.float32, -k, k),
    }

    embeddings = jax.random.normal(keys[8], (B, T, E), jnp.float32)

    tag_scores, pd_scores = lstm_classifier_forward(embeddings, params)
    jax.block_until_ready((tag_scores, pd_scores))

    assert tag_scores.shape == (B, L)
    assert pd_scores.shape == (B, T, 3)
    # log-softmax sanity: exp of each row sums to 1
    assert bool(jnp.allclose(jnp.sum(jnp.exp(tag_scores), axis=-1), 1.0, atol=1e-4))
    assert bool(jnp.allclose(jnp.sum(jnp.exp(pd_scores), axis=-1), 1.0, atol=1e-4))
    # TODO(synk): bidirectional=True / num_layers>1 / dropout>0 variants of the module
    # are not implemented (the module defaults False / 1 / 0 are what this forward uses).
    print("KERNEL_OK")
</pallas_src>

<mosaic_0001>
module attributes {stable_mosaic.version = 11 : i64} {
  func.func @fused_lstm_classifier_kernel(%arg0: i32, %arg1: memref<2x8x16xf32, #tpu.memory_space<vmem>>, %arg2: memref<16x128xf32, #tpu.memory_space<vmem>>, %arg3: memref<32x128xf32, #tpu.memory_space<vmem>>, %arg4: memref<1x128xf32, #tpu.memory_space<vmem>>, %arg5: memref<32x5xf32, #tpu.memory_space<vmem>>, %arg6: memref<1x5xf32, #tpu.memory_space<vmem>>, %arg7: memref<32x3xf32, #tpu.memory_space<vmem>>, %arg8: memref<1x3xf32, #tpu.memory_space<vmem>>, %arg9: memref<2x5xf32, #tpu.memory_space<vmem>>, %arg10: memref<2x8x3xf32, #tpu.memory_space<vmem>>) attributes {dimension_semantics = [#tpu.dimension_semantics<parallel>], iteration_bounds = array<i64: 1>, scalar_prefetch = 0 : i64, scratch_operands = 0 : i64, tpu.core_type = #tpu.core_type<tc>, window_params = [{transform_indices = @transform_0, window_bounds = array<i64: 2, 8, 16>}, {pipeline_mode = #tpu.pipeline_mode<synchronous>, transform_indices = @transform_1, window_bounds = array<i64: 16, 128>}, {pipeline_mode = #tpu.pipeline_mode<synchronous>, transform_indices = @transform_2, window_bounds = array<i64: 32, 128>}, {pipeline_mode = #tpu.pipeline_mode<synchronous>, transform_indices = @transform_3, window_bounds = array<i64: 1, 128>}, {pipeline_mode = #tpu.pipeline_mode<synchronous>, transform_indices = @transform_4, window_bounds = array<i64: 32, 5>}, {pipeline_mode = #tpu.pipeline_mode<synchronous>, transform_indices = @transform_5, window_bounds = array<i64: 1, 5>}, {pipeline_mode = #tpu.pipeline_mode<synchronous>, transform_indices = @transform_6, window_bounds = array<i64: 32, 3>}, {pipeline_mode = #tpu.pipeline_mode<synchronous>, transform_indices = @transform_7, window_bounds = array<i64: 1, 3>}, {transform_indices = @transform_8, window_bounds = array<i64: 2, 5>}, {transform_indices = @transform_9, window_bounds = array<i64: 2, 8, 3>}]} {
    %c0 = arith.constant 0 : index
    %c0_0 = arith.constant 0 : index
    %c0_1 = arith.constant 0 : index
    %0 = vector.load %arg1[%c0, %c0_0, %c0_1] : memref<2x8x16xf32, #tpu.memory_space<vmem>>, vector<2x8x16xf32>
    %1 = vector.extract_strided_slice %0 {offsets = [0, 0, 0], sizes = [2, 1, 16], strides = [1, 1, 1]} : vector<2x8x16xf32> to vector<2x1x16xf32>
    %2 = vector.shape_cast %1 : vector<2x1x16xf32> to vector<2x16xf32>
    %3 = vector.extract_strided_slice %0 {offsets = [0, 1, 0], sizes = [2, 1, 16], strides = [1, 1, 1]} : vector<2x8x16xf32> to vector<2x1x16xf32>
    %4 = vector.shape_cast %3 : vector<2x1x16xf32> to vector<2x16xf32>
    %5 = vector.extract_strided_slice %0 {offsets = [0, 2, 0], sizes = [2, 1, 16], strides = [1, 1, 1]} : vector<2x8x16xf32> to vector<2x1x16xf32>
    %6 = vector.shape_cast %5 : vector<2x1x16xf32> to vector<2x16xf32>
    %7 = vector.extract_strided_slice %0 {offsets = [0, 3, 0], sizes = [2, 1, 16], strides = [1, 1, 1]} : vector<2x8x16xf32> to vector<2x1x16xf32>
    %8 = vector.shape_cast %7 : vector<2x1x16xf32> to vector<2x16xf32>
    %9 = vector.extract_strided_slice %0 {offsets = [0, 4, 0], sizes = [2, 1, 16], strides = [1, 1, 1]} : vector<2x8x16xf32> to vector<2x1x16xf32>
    %10 = vector.shape_cast %9 : vector<2x1x16xf32> to vector<2x16xf32>
    %11 = vector.extract_strided_slice %0 {offsets = [0, 5, 0], sizes = [2, 1, 16], strides = [1, 1, 1]} : vector<2x8x16xf32> to vector<2x1x16xf32>
    %12 = vector.shape_cast %11 : vector<2x1x16xf32> to vector<2x16xf32>
    %13 = vector.extract_strided_slice %0 {offsets = [0, 6, 0], sizes = [2, 1, 16], strides = [1, 1, 1]} : vector<2x8x16xf32> to vector<2x1x16xf32>
    %14 = vector.shape_cast %13 : vector<2x1x16xf32> to vector<2x16xf32>
    %15 = vector.extract_strided_slice %0 {offsets = [0, 7, 0], sizes = [2, 1, 16], strides = [1, 1, 1]} : vector<2x8x16xf32> to vector<2x1x16xf32>
    %16 = vector.shape_cast %15 : vector<2x1x16xf32> to vector<2x16xf32>
    %17 = vector.shape_cast %2 : vector<2x16xf32> to vector<1x2x16xf32>
    %18 = vector.shape_cast %4 : vector<2x16xf32> to vector<1x2x16xf32>
    %19 = vector.shape_cast %6 : vector<2x16xf32> to vector<1x2x16xf32>
    %20 = vector.shape_cast %8 : vector<2x16xf32> to vector<1x2x16xf32>
    %21 = vector.shape_cast %10 : vector<2x16xf32> to vector<1x2x16xf32>
    %22 = vector.shape_cast %12 : vector<2x16xf32> to vector<1x2x16xf32>
    %23 = vector.shape_cast %14 : vector<2x16xf32> to vector<1x2x16xf32>
    %24 = vector.shape_cast %16 : vector<2x16xf32> to vector<1x2x16xf32>
    %25 = tpu.concatenate %17, %18, %19, %20, %21, %22, %23, %24 in 0 : vector<1x2x16xf32>, vector<1x2x16xf32>, vector<1x2x16xf32>, vector<1x2x16xf32>, vector<1x2x16xf32>, vector<1x2x16xf32>, vector<1x2x16xf32>, vector<1x2x16xf32> -> vector<8x2x16xf32>
    %26 = vector.shape_cast %25 : vector<8x2x16xf32> to vector<16x16xf32>
    %c0_2 = arith.constant 0 : index
    %c0_3 = arith.constant 0 : index
    %27 = vector.load %arg2[%c0_2, %c0_3] : memref<16x128xf32, #tpu.memory_space<vmem>>, vector<16x128xf32>
    %cst = arith.constant dense<0.000000e+00> : vector<16x128xf32>
    %28 = tpu.matmul %26, %27, %cst {dimension_numbers = #tpu.dot_dimension_numbers<[1], [0], [0], [1], [0, 0, 1, 1], [], []>} : vector<16x16xf32>, vector<16x128xf32>, vector<16x128xf32> -> vector<16x128xf32>
    %c0_4 = arith.constant 0 : index
    %c0_5 = arith.constant 0 : index
    %29 = vector.load %arg4[%c0_4, %c0_5] : memref<1x128xf32, #tpu.memory_space<vmem>>, vector<1x128xf32>
    %30 = vector.broadcast %29 : vector<1x128xf32> to vector<16x128xf32>
    %31 = arith.addf %28, %30 : vector<16x128xf32>
    %32 = vector.shape_cast %31 : vector<16x128xf32> to vector<8x2x128xf32>
    %c0_6 = arith.constant 0 : index
    %c0_7 = arith.constant 0 : index
    %33 = vector.load %arg3[%c0_6, %c0_7] : memref<32x128xf32, #tpu.memory_space<vmem>>, vector<32x128xf32>
    %cst_8 = arith.constant 0.000000e+00 : f32
    %34 = vector.broadcast %cst_8 : f32 to vector<2x32xf32>
    %cst_9 = arith.constant 0.000000e+00 : f32
    %35 = vector.broadcast %cst_9 : f32 to vector<2x32xf32>
    %36 = vector.extract_strided_slice %32 {offsets = [0, 0, 0], sizes = [1, 2, 128], strides = [1, 1, 1]} : vector<8x2x128xf32> to vector<1x2x128xf32>
    %37 = vector.shape_cast %36 : vector<1x2x128xf32> to vector<2x128xf32>
    %cst_10 = arith.constant dense<0.000000e+00> : vector<2x128xf32>
    %38 = tpu.matmul %34, %33, %cst_10 {dimension_numbers = #tpu.dot_dimension_numbers<[1], [0], [0], [1], [0, 0, 1, 1], [], []>} : vector<2x32xf32>, vector<32x128xf32>, vector<2x128xf32> -> vector<2x128xf32>
    %39 = arith.addf %37, %38 : vector<2x128xf32>
    %40 = vector.extract_strided_slice %39 {offsets = [0, 0], sizes = [2, 32], strides = [1, 1]} : vector<2x128xf32> to vector<2x32xf32>
    %41 = arith.negf %40 : vector<2x32xf32>
    %42 = math.exp %41 : vector<2x32xf32>
    %cst_11 = arith.constant 1.000000e+00 : f32
    %43 = vector.broadcast %cst_11 : f32 to vector<2x32xf32>
    %44 = arith.addf %43, %42 : vector<2x32xf32>
    %45 = arith.divf %43, %44 : vector<2x32xf32>
    %46 = vector.extract_strided_slice %39 {offsets = [0, 32], sizes = [2, 32], strides = [1, 1]} : vector<2x128xf32> to vector<2x32xf32>
    %47 = arith.negf %46 : vector<2x32xf32>
    %48 = math.exp %47 : vector<2x32xf32>
    %cst_12 = arith.constant 1.000000e+00 : f32
    %49 = vector.broadcast %cst_12 : f32 to vector<2x32xf32>
    %50 = arith.addf %49, %48 : vector<2x32xf32>
    %51 = arith.divf %49, %50 : vector<2x32xf32>
    %52 = vector.extract_strided_slice %39 {offsets = [0, 64], sizes = [2, 32], strides = [1, 1]} : vector<2x128xf32> to vector<2x32xf32>
    %53 = math.tanh %52 : vector<2x32xf32>
    %54 = vector.extract_strided_slice %39 {offsets = [0, 96], sizes = [2, 32], strides = [1, 1]} : vector<2x128xf32> to vector<2x32xf32>
    %55 = arith.negf %54 : vector<2x32xf32>
    %56 = math.exp %55 : vector<2x32xf32>
    %cst_13 = arith.constant 1.000000e+00 : f32
    %57 = vector.broadcast %cst_13 : f32 to vector<2x32xf32>
    %58 = arith.addf %57, %56 : vector<2x32xf32>
    %59 = arith.divf %57, %58 : vector<2x32xf32>
    %60 = arith.mulf %51, %35 : vector<2x32xf32>
    %61 = arith.mulf %45, %53 : vector<2x32xf32>
    %62 = arith.addf %60, %61 : vector<2x32xf32>
    %63 = math.tanh %62 : vector<2x32xf32>
    %64 = arith.mulf %59, %63 : vector<2x32xf32>
    %65 = vector.extract_strided_slice %32 {offsets = [1, 0, 0], sizes = [1, 2, 128], strides = [1, 1, 1]} : vector<8x2x128xf32> to vector<1x2x128xf32>
    %66 = vector.shape_cast %65 : vector<1x2x128xf32> to vector<2x128xf32>
    %cst_14 = arith.constant dense<0.000000e+00> : vector<2x128xf32>
    %67 = tpu.matmul %64, %33, %cst_14 {dimension_numbers = #tpu.dot_dimension_numbers<[1], [0], [0], [1], [0, 0, 1, 1], [], []>} : vector<2x32xf32>, vector<32x128xf32>, vector<2x128xf32> -> vector<2x128xf32>
    %68 = arith.addf %66, %67 : vector<2x128xf32>
    %69 = vector.extract_strided_slice %68 {offsets = [0, 0], sizes = [2, 32], strides = [1, 1]} : vector<2x128xf32> to vector<2x32xf32>
    %70 = arith.negf %69 : vector<2x32xf32>
    %71 = math.exp %70 : vector<2x32xf32>
    %cst_15 = arith.constant 1.000000e+00 : f32
    %72 = vector.broadcast %cst_15 : f32 to vector<2x32xf32>
    %73 = arith.addf %72, %71 : vector<2x32xf32>
    %74 = arith.divf %72, %73 : vector<2x32xf32>
    %75 = vector.extract_strided_slice %68 {offsets = [0, 32], sizes = [2, 32], strides = [1, 1]} : vector<2x128xf32> to vector<2x32xf32>
    %76 = arith.negf %75 : vector<2x32xf32>
    %77 = math.exp %76 : vector<2x32xf32>
    %cst_16 = arith.constant 1.000000e+00 : f32
    %78 = vector.broadcast %cst_16 : f32 to vector<2x32xf32>
    %79 = arith.addf %78, %77 : vector<2x32xf32>
    %80 = arith.divf %78, %79 : vector<2x32xf32>
    %81 = vector.extract_strided_slice %68 {offsets = [0, 64], sizes = [2, 32], strides = [1, 1]} : vector<2x128xf32> to vector<2x32xf32>
    %82 = math.tanh %81 : vector<2x32xf32>
    %83 = vector.extract_strided_slice %68 {offsets = [0, 96], sizes = [2, 32], strides = [1, 1]} : vector<2x128xf32> to vector<2x32xf32>
    %84 = arith.negf %83 : vector<2x32xf32>
    %85 = math.exp %84 : vector<2x32xf32>
    %cst_17 = arith.constant 1.000000e+00 : f32
    %86 = vector.broadcast %cst_17 : f32 to vector<2x32xf32>
    %87 = arith.addf %86, %85 : vector<2x32xf32>
    %88 = arith.divf %86, %87 : vector<2x32xf32>
    %89 = arith.mulf %80, %62 : vector<2x32xf32>
    %90 = arith.mulf %74, %82 : vector<2x32xf32>
    %91 = arith.addf %89, %90 : vector<2x32xf32>
    %92 = math.tanh %91 : vector<2x32xf32>
    %93 = arith.mulf %88, %92 : vector<2x32xf32>
    %94 = vector.extract_strided_slice %32 {offsets = [2, 0, 0], sizes = [1, 2, 128], strides = [1, 1, 1]} : vector<8x2x128xf32> to vector<1x2x128xf32>
    %95 = vector.shape_cast %94 : vector<1x2x128xf32> to vector<2x128xf32>
    %cst_18 = arith.constant dense<0.000000e+00> : vector<2x128xf32>
    %96 = tpu.matmul %93, %33, %cst_18 {dimension_numbers = #tpu.dot_dimension_numbers<[1], [0], [0], [1], [0, 0, 1, 1], [], []>} : vector<2x32xf32>, vector<32x128xf32>, vector<2x128xf32> -> vector<2x128xf32>
    %97 = arith.addf %95, %96 : vector<2x128xf32>
    %98 = vector.extract_strided_slice %97 {offsets = [0, 0], sizes = [2, 32], strides = [1, 1]} : vector<2x128xf32> to vector<2x32xf32>
    %99 = arith.negf %98 : vector<2x32xf32>
    %100 = math.exp %99 : vector<2x32xf32>
    %cst_19 = arith.constant 1.000000e+00 : f32
    %101 = vector.broadcast %cst_19 : f32 to vector<2x32xf32>
    %102 = arith.addf %101, %100 : vector<2x32xf32>
    %103 = arith.divf %101, %102 : vector<2x32xf32>
    %104 = vector.extract_strided_slice %97 {offsets = [0, 32], sizes = [2, 32], strides = [1, 1]} : vector<2x128xf32> to vector<2x32xf32>
    %105 = arith.negf %104 : vector<2x32xf32>
    %106 = math.exp %105 : vector<2x32xf32>
    %cst_20 = arith.constant 1.000000e+00 : f32
    %107 = vector.broadcast %cst_20 : f32 to vector<2x32xf32>
    %108 = arith.addf %107, %106 : vector<2x32xf32>
    %109 = arith.divf %107, %108 : vector<2x32xf32>
    %110 = vector.extract_strided_slice %97 {offsets = [0, 64], sizes = [2, 32], strides = [1, 1]} : vector<2x128xf32> to vector<2x32xf32>
    %111 = math.tanh %110 : vector<2x32xf32>
    %112 = vector.extract_strided_slice %97 {offsets = [0, 96], sizes = [2, 32], strides = [1, 1]} : vector<2x128xf32> to vector<2x32xf32>
    %113 = arith.negf %112 : vector<2x32xf32>
    %114 = math.exp %113 : vector<2x32xf32>
    %cst_21 = arith.constant 1.000000e+00 : f32
    %115 = vector.broadcast %cst_21 : f32 to vector<2x32xf32>
    %116 = arith.addf %115, %114 : vector<2x32xf32>
    %117 = arith.divf %115, %116 : vector<2x32xf32>
    %118 = arith.mulf %109, %91 : vector<2x32xf32>
    %119 = arith.mulf %103, %111 : vector<2x32xf32>
    %120 = arith.addf %118, %119 : vector<2x32xf32>
    %121 = math.tanh %120 : vector<2x32xf32>
    %122 = arith.mulf %117, %121 : vector<2x32xf32>
    %123 = vector.extract_strided_slice %32 {offsets = [3, 0, 0], sizes = [1, 2, 128], strides = [1, 1, 1]} : vector<8x2x128xf32> to vector<1x2x128xf32>
    %124 = vector.shape_cast %123 : vector<1x2x128xf32> to vector<2x128xf32>
    %cst_22 = arith.constant dense<0.000000e+00> : vector<2x128xf32>
    %125 = tpu.matmul %122, %33, %cst_22 {dimension_numbers = #tpu.dot_dimension_numbers<[1], [0], [0], [1], [0, 0, 1, 1], [], []>} : vector<2x32xf32>, vector<32x128xf32>, vector<2x128xf32> -> vector<2x128xf32>
    %126 = arith.addf %124, %125 : vector<2x128xf32>
    %127 = vector.extract_strided_slice %126 {offsets = [0, 0], sizes = [2, 32], strides = [1, 1]} : vector<2x128xf32> to vector<2x32xf32>
    %128 = arith.negf %127 : vector<2x32xf32>
    %129 = math.exp %128 : vector<2x32xf32>
    %cst_23 = arith.constant 1.000000e+00 : f32
    %130 = vector.broadcast %cst_23 : f32 to vector<2x32xf32>
    %131 = arith.addf %130, %129 : vector<2x32xf32>
    %132 = arith.divf %130, %131 : vector<2x32xf32>
    %133 = vector.extract_strided_slice %126 {offsets = [0, 32], sizes = [2, 32], strides = [1, 1]} : vector<2x128xf32> to vector<2x32xf32>
    %134 = arith.negf %133 : vector<2x32xf32>
    %135 = math.exp %134 : vector<2x32xf32>
    %cst_24 = arith.constant 1.000000e+00 : f32
    %136 = vector.broadcast %cst_24 : f32 to vector<2x32xf32>
    %137 = arith.addf %136, %135 : vector<2x32xf32>
    %138 = arith.divf %136, %137 : vector<2x32xf32>
    %139 = vector.extract_strided_slice %126 {offsets = [0, 64], sizes = [2, 32], strides = [1, 1]} : vector<2x128xf32> to vector<2x32xf32>
    %140 = math.tanh %139 : vector<2x32xf32>
    %141 = vector.extract_strided_slice %126 {offsets = [0, 96], sizes = [2, 32], strides = [1, 1]} : vector<2x128xf32> to vector<2x32xf32>
    %142 = arith.negf %141 : vector<2x32xf32>
    %143 = math.exp %142 : vector<2x32xf32>
    %cst_25 = arith.constant 1.000000e+00 : f32
    %144 = vector.broadcast %cst_25 : f32 to vector<2x32xf32>
    %145 = arith.addf %144, %143 : vector<2x32xf32>
    %146 = arith.divf %144, %145 : vector<2x32xf32>
    %147 = arith.mulf %138, %120 : vector<2x32xf32>
    %148 = arith.mulf %132, %140 : vector<2x32xf32>
    %149 = arith.addf %147, %148 : vector<2x32xf32>
    %150 = math.tanh %149 : vector<2x32xf32>
    %151 = arith.mulf %146, %150 : vector<2x32xf32>
    %152 = vector.extract_strided_slice %32 {offsets = [4, 0, 0], sizes = [1, 2, 128], strides = [1, 1, 1]} : vector<8x2x128xf32> to vector<1x2x128xf32>
    %153 = vector.shape_cast %152 : vector<1x2x128xf32> to vector<2x128xf32>
    %cst_26 = arith.constant dense<0.000000e+00> : vector<2x128xf32>
    %154 = tpu.matmul %151, %33, %cst_26 {dimension_numbers = #tpu.dot_dimension_numbers<[1], [0], [0], [1], [0, 0, 1, 1], [], []>} : vector<2x32xf32>, vector<32x128xf32>, vector<2x128xf32> -> vector<2x128xf32>
    %155 = arith.addf %153, %154 : vector<2x128xf32>
    %156 = vector.extract_strided_slice %155 {offsets = [0, 0], sizes = [2, 32], strides = [1, 1]} : vector<2x128xf32> to vector<2x32xf32>
    %157 = arith.negf %156 : vector<2x32xf32>
    %158 = math.exp %157 : vector<2x32xf32>
    %cst_27 = arith.constant 1.000000e+00 : f32
    %159 = vector.broadcast %cst_27 : f32 to vector<2x32xf32>
    %160 = arith.addf %159, %158 : vector<2x32xf32>
    %161 = arith.divf %159, %160 : vector<2x32xf32>
    %162 = vector.extract_strided_slice %155 {offsets = [0, 32], sizes = [2, 32], strides = [1, 1]} : vector<2x128xf32> to vector<2x32xf32>
    %163 = arith.negf %162 : vector<2x32xf32>
    %164 = math.exp %163 : vector<2x32xf32>
    %cst_28 = arith.constant 1.000000e+00 : f32
    %165 = vector.broadcast %cst_28 : f32 to vector<2x32xf32>
    %166 = arith.addf %165, %164 : vector<2x32xf32>
    %167 = arith.divf %165, %166 : vector<2x32xf32>
    %168 = vector.extract_strided_slice %155 {offsets = [0, 64], sizes = [2, 32], strides = [1, 1]} : vector<2x128xf32> to vector<2x32xf32>
    %169 = math.tanh %168 : vector<2x32xf32>
    %170 = vector.extract_strided_slice %155 {offsets = [0, 96], sizes = [2, 32], strides = [1, 1]} : vector<2x128xf32> to vector<2x32xf32>
    %171 = arith.negf %170 : vector<2x32xf32>
    %172 = math.exp %171 : vector<2x32xf32>
    %cst_29 = arith.constant 1.000000e+00 : f32
    %173 = vector.broadcast %cst_29 : f32 to vector<2x32xf32>
    %174 = arith.addf %173, %172 : vector<2x32xf32>
    %175 = arith.divf %173, %174 : vector<2x32xf32>
    %176 = arith.mulf %167, %149 : vector<2x32xf32>
    %177 = arith.mulf %161, %169 : vector<2x32xf32>
    %178 = arith.addf %176, %177 : vector<2x32xf32>
    %179 = math.tanh %178 : vector<2x32xf32>
    %180 = arith.mulf %175, %179 : vector<2x32xf32>
    %181 = vector.extract_strided_slice %32 {offsets = [5, 0, 0], sizes = [1, 2, 128], strides = [1, 1, 1]} : vector<8x2x128xf32> to vector<1x2x128xf32>
    %182 = vector.shape_cast %181 : vector<1x2x128xf32> to vector<2x128xf32>
    %cst_30 = arith.constant dense<0.000000e+00> : vector<2x128xf32>
    %183 = tpu.matmul %180, %33, %cst_30 {dimension_numbers = #tpu.dot_dimension_numbers<[1], [0], [0], [1], [0, 0, 1, 1], [], []>} : vector<2x32xf32>, vector<32x128xf32>, vector<2x128xf32> -> vector<2x128xf32>
    %184 = arith.addf %182, %183 : vector<2x128xf32>
    %185 = vector.extract_strided_slice %184 {offsets = [0, 0], sizes = [2, 32], strides = [1, 1]} : vector<2x128xf32> to vector<2x32xf32>
    %186 = arith.negf %185 : vector<2x32xf32>
    %187 = math.exp %186 : vector<2x32xf32>
    %cst_31 = arith.constant 1.000000e+00 : f32
    %188 = vector.broadcast %cst_31 : f32 to vector<2x32xf32>
    %189 = arith.addf %188, %187 : vector<2x32xf32>
    %190 = arith.divf %188, %189 : vector<2x32xf32>
    %191 = vector.extract_strided_slice %184 {offsets = [0, 32], sizes = [2, 32], strides = [1, 1]} : vector<2x128xf32> to vector<2x32xf32>
    %192 = arith.negf %191 : vector<2x32xf32>
    %193 = math.exp %192 : vector<2x32xf32>
    %cst_32 = arith.constant 1.000000e+00 : f32
    %194 = vector.broadcast %cst_32 : f32 to vector<2x32xf32>
    %195 = arith.addf %194, %193 : vector<2x32xf32>
    %196 = arith.divf %194, %195 : vector<2x32xf32>
    %197 = vector.extract_strided_slice %184 {offsets = [0, 64], sizes = [2, 32], strides = [1, 1]} : vector<2x128xf32> to vector<2x32xf32>
    %198 = math.tanh %197 : vector<2x32xf32>
    %199 = vector.extract_strided_slice %184 {offsets = [0, 96], sizes = [2, 32], strides = [1, 1]} : vector<2x128xf32> to vector<2x32xf32>
    %200 = arith.negf %199 : vector<2x32xf32>
    %201 = math.exp %200 : vector<2x32xf32>
    %cst_33 = arith.constant 1.000000e+00 : f32
    %202 = vector.broadcast %cst_33 : f32 to vector<2x32xf32>
    %203 = arith.addf %202, %201 : vector<2x32xf32>
    %204 = arith.divf %202, %203 : vector<2x32xf32>
    %205 = arith.mulf %196, %178 : vector<2x32xf32>
    %206 = arith.mulf %190, %198 : vector<2x32xf32>
    %207 = arith.addf %205, %206 : vector<2x32xf32>
    %208 = math.tanh %207 : vector<2x32xf32>
    %209 = arith.mulf %204, %208 : vector<2x32xf32>
    %210 = vector.extract_strided_slice %32 {offsets = [6, 0, 0], sizes = [1, 2, 128], strides = [1, 1, 1]} : vector<8x2x128xf32> to vector<1x2x128xf32>
    %211 = vector.shape_cast %210 : vector<1x2x128xf32> to vector<2x128xf32>
    %cst_34 = arith.constant dense<0.000000e+00> : vector<2x128xf32>
    %212 = tpu.matmul %209, %33, %cst_34 {dimension_numbers = #tpu.dot_dimension_numbers<[1], [0], [0], [1], [0, 0, 1, 1], [], []>} : vector<2x32xf32>, vector<32x128xf32>, vector<2x128xf32> -> vector<2x128xf32>
    %213 = arith.addf %211, %212 : vector<2x128xf32>
    %214 = vector.extract_strided_slice %213 {offsets = [0, 0], sizes = [2, 32], strides = [1, 1]} : vector<2x128xf32> to vector<2x32xf32>
    %215 = arith.negf %214 : vector<2x32xf32>
    %216 = math.exp %215 : vector<2x32xf32>
    %cst_35 = arith.constant 1.000000e+00 : f32
    %217 = vector.broadcast %cst_35 : f32 to vector<2x32xf32>
    %218 = arith.addf %217, %216 : vector<2x32xf32>
    %219 = arith.divf %217, %218 : vector<2x32xf32>
    %220 = vector.extract_strided_slice %213 {offsets = [0, 32], sizes = [2, 32], strides = [1, 1]} : vector<2x128xf32> to vector<2x32xf32>
    %221 = arith.negf %220 : vector<2x32xf32>
    %222 = math.exp %221 : vector<2x32xf32>
    %cst_36 = arith.constant 1.000000e+00 : f32
    %223 = vector.broadcast %cst_36 : f32 to vector<2x32xf32>
    %224 = arith.addf %223, %222 : vector<2x32xf32>
    %225 = arith.divf %223, %224 : vector<2x32xf32>
    %226 = vector.extract_strided_slice %213 {offsets = [0, 64], sizes = [2, 32], strides = [1, 1]} : vector<2x128xf32> to vector<2x32xf32>
    %227 = math.tanh %226 : vector<2x32xf32>
    %228 = vector.extract_strided_slice %213 {offsets = [0, 96], sizes = [2, 32], strides = [1, 1]} : vector<2x128xf32> to vector<2x32xf32>
    %229 = arith.negf %228 : vector<2x32xf32>
    %230 = math.exp %229 : vector<2x32xf32>
    %cst_37 = arith.constant 1.000000e+00 : f32
    %231 = vector.broadcast %cst_37 : f32 to vector<2x32xf32>
    %232 = arith.addf %231, %230 : vector<2x32xf32>
    %233 = arith.divf %231, %232 : vector<2x32xf32>
    %234 = arith.mulf %225, %207 : vector<2x32xf32>
    %235 = arith.mulf %219, %227 : vector<2x32xf32>
    %236 = arith.addf %234, %235 : vector<2x32xf32>
    %237 = math.tanh %236 : vector<2x32xf32>
    %238 = arith.mulf %233, %237 : vector<2x32xf32>
    %239 = vector.extract_strided_slice %32 {offsets = [7, 0, 0], sizes = [1, 2, 128], strides = [1, 1, 1]} : vector<8x2x128xf32> to vector<1x2x128xf32>
    %240 = vector.shape_cast %239 : vector<1x2x128xf32> to vector<2x128xf32>
    %cst_38 = arith.constant dense<0.000000e+00> : vector<2x128xf32>
    %241 = tpu.matmul %238, %33, %cst_38 {dimension_numbers = #tpu.dot_dimension_numbers<[1], [0], [0], [1], [0, 0, 1, 1], [], []>} : vector<2x32xf32>, vector<32x128xf32>, vector<2x128xf32> -> vector<2x128xf32>
    %242 = arith.addf %240, %241 : vector<2x128xf32>
    %243 = vector.extract_strided_slice %242 {offsets = [0, 0], sizes = [2, 32], strides = [1, 1]} : vector<2x128xf32> to vector<2x32xf32>
    %244 = arith.negf %243 : vector<2x32xf32>
    %245 = math.exp %244 : vector<2x32xf32>
    %cst_39 = arith.constant 1.000000e+00 : f32
    %246 = vector.broadcast %cst_39 : f32 to vector<2x32xf32>
    %247 = arith.addf %246, %245 : vector<2x32xf32>
    %248 = arith.divf %246, %247 : vector<2x32xf32>
    %249 = vector.extract_strided_slice %242 {offsets = [0, 32], sizes = [2, 32], strides = [1, 1]} : vector<2x128xf32> to vector<2x32xf32>
    %250 = arith.negf %249 : vector<2x32xf32>
    %251 = math.exp %250 : vector<2x32xf32>
    %cst_40 = arith.constant 1.000000e+00 : f32
    %252 = vector.broadcast %cst_40 : f32 to vector<2x32xf32>
    %253 = arith.addf %252, %251 : vector<2x32xf32>
    %254 = arith.divf %252, %253 : vector<2x32xf32>
    %255 = vector.extract_strided_slice %242 {offsets = [0, 64], sizes = [2, 32], strides = [1, 1]} : vector<2x128xf32> to vector<2x32xf32>
    %256 = math.tanh %255 : vector<2x32xf32>
    %257 = vector.extract_strided_slice %242 {offsets = [0, 96], sizes = [2, 32], strides = [1, 1]} : vector<2x128xf32> to vector<2x32xf32>
    %258 = arith.negf %257 : vector<2x32xf32>
    %259 = math.exp %258 : vector<2x32xf32>
    %cst_41 = arith.constant 1.000000e+00 : f32
    %260 = vector.broadcast %cst_41 : f32 to vector<2x32xf32>
    %261 = arith.addf %260, %259 : vector<2x32xf32>
    %262 = arith.divf %260, %261 : vector<2x32xf32>
    %263 = arith.mulf %254, %236 : vector<2x32xf32>
    %264 = arith.mulf %248, %256 : vector<2x32xf32>
    %265 = arith.addf %263, %264 : vector<2x32xf32>
    %266 = math.tanh %265 : vector<2x32xf32>
    %267 = arith.mulf %262, %266 : vector<2x32xf32>
    %268 = vector.shape_cast %64 : vector<2x32xf32> to vector<2x1x32xf32>
    %269 = vector.shape_cast %93 : vector<2x32xf32> to vector<2x1x32xf32>
    %270 = vector.shape_cast %122 : vector<2x32xf32> to vector<2x1x32xf32>
    %271 = vector.shape_cast %151 : vector<2x32xf32> to vector<2x1x32xf32>
    %272 = vector.shape_cast %180 : vector<2x32xf32> to vector<2x1x32xf32>
    %273 = vector.shape_cast %209 : vector<2x32xf32> to vector<2x1x32xf32>
    %274 = vector.shape_cast %238 : vector<2x32xf32> to vector<2x1x32xf32>
    %275 = vector.shape_cast %267 : vector<2x32xf32> to vector<2x1x32xf32>
    %276 = tpu.concatenate %268, %269, %270, %271, %272, %273, %274, %275 in 1 : vector<2x1x32xf32>, vector<2x1x32xf32>, vector<2x1x32xf32>, vector<2x1x32xf32>, vector<2x1x32xf32>, vector<2x1x32xf32>, vector<2x1x32xf32>, vector<2x1x32xf32> -> vector<2x8x32xf32>
    %277 = vector.shape_cast %276 : vector<2x8x32xf32> to vector<16x32xf32>
    %c0_42 = arith.constant 0 : index
    %c0_43 = arith.constant 0 : index
    %278 = vector.load %arg7[%c0_42, %c0_43] : memref<32x3xf32, #tpu.memory_space<vmem>>, vector<32x3xf32>
    %cst_44 = arith.constant dense<0.000000e+00> : vector<16x3xf32>
    %279 = tpu.matmul %277, %278, %cst_44 {dimension_numbers = #tpu.dot_dimension_numbers<[1], [0], [0], [1], [0, 0, 1, 1], [], []>} : vector<16x32xf32>, vector<32x3xf32>, vector<16x3xf32> -> vector<16x3xf32>
    %c0_45 = arith.constant 0 : index
    %c0_46 = arith.constant 0 : index
    %280 = vector.load %arg8[%c0_45, %c0_46] : memref<1x3xf32, #tpu.memory_space<vmem>>, vector<1x3xf32>
    %281 = vector.broadcast %280 : vector<1x3xf32> to vector<16x3xf32>
    %282 = arith.addf %279, %281 : vector<16x3xf32>
    %cst_47 = arith.constant dense<0xFF800000> : vector<16xf32>
    %283 = vector.multi_reduction <maximumf>, %282, %cst_47 [1] : vector<16x3xf32> to vector<16xf32>
    %284 = vector.shape_cast %283 : vector<16xf32> to vector<16x1xf32>
    %285 = vector.broadcast %284 : vector<16x1xf32> to vector<16x3xf32>
    %286 = arith.subf %282, %285 : vector<16x3xf32>
    %287 = math.exp %286 : vector<16x3xf32>
    %cst_48 = arith.constant dense<0.000000e+00> : vector<16xf32>
    %288 = vector.multi_reduction <add>, %287, %cst_48 [1] : vector<16x3xf32> to vector<16xf32>
    %289 = vector.shape_cast %288 : vector<16xf32> to vector<16x1xf32>
    %290 = math.log %289 : vector<16x1xf32>
    %291 = vector.broadcast %290 : vector<16x1xf32> to vector<16x3xf32>
    %292 = arith.subf %286, %291 : vector<16x3xf32>
    %293 = vector.shape_cast %292 : vector<16x3xf32> to vector<2x8x3xf32>
    %c0_49 = arith.constant 0 : index
    %c0_50 = arith.constant 0 : index
    %c0_51 = arith.constant 0 : index
    %294 = vector.load %arg10[%c0_49, %c0_50, %c0_51] : memref<2x8x3xf32, #tpu.memory_space<vmem>>, vector<2x8x3xf32>
    tpu.vector_store %arg10[%c0_49, %c0_50, %c0_51], %293 {strides = array<i32>} : memref<2x8x3xf32, #tpu.memory_space<vmem>>, vector<2x8x3xf32>,
    %c0_52 = arith.constant 0 : index
    %c0_53 = arith.constant 0 : index
    %295 = vector.load %arg5[%c0_52, %c0_53] : memref<32x5xf32, #tpu.memory_space<vmem>>, vector<32x5xf32>
    %cst_54 = arith.constant dense<0.000000e+00> : vector<2x5xf32>
    %296 = tpu.matmul %267, %295, %cst_54 {dimension_numbers = #tpu.dot_dimension_numbers<[1], [0], [0], [1], [0, 0, 1, 1], [], []>} : vector<2x32xf32>, vector<32x5xf32>, vector<2x5xf32> -> vector<2x5xf32>
    %c0_55 = arith.constant 0 : index
    %c0_56 = arith.constant 0 : index
    %297 = vector.load %arg6[%c0_55, %c0_56] : memref<1x5xf32, #tpu.memory_space<vmem>>, vector<1x5xf32>
    %298 = vector.broadcast %297 : vector<1x5xf32> to vector<2x5xf32>
    %299 = arith.addf %296, %298 : vector<2x5xf32>
    %cst_57 = arith.constant dense<0xFF800000> : vector<2xf32>
    %300 = vector.multi_reduction <maximumf>, %299, %cst_57 [1] : vector<2x5xf32> to vector<2xf32>
    %301 = vector.shape_cast %300 : vector<2xf32> to vector<2x1xf32>
    %302 = vector.broadcast %301 : vector<2x1xf32> to vector<2x5xf32>
    %303 = arith.subf %299, %302 : vector<2x5xf32>
    %304 = math.exp %303 : vector<2x5xf32>
    %cst_58 = arith.constant dense<0.000000e+00> : vector<2xf32>
    %305 = vector.multi_reduction <add>, %304, %cst_58 [1] : vector<2x5xf32> to vector<2xf32>
    %306 = vector.shape_cast %305 : vector<2xf32> to vector<2x1xf32>
    %307 = math.log %306 : vector<2x1xf32>
    %308 = vector.broadcast %307 : vector<2x1xf32> to vector<2x5xf32>
    %309 = arith.subf %303, %308 : vector<2x5xf32>
    %c0_59 = arith.constant 0 : index
    %c0_60 = arith.constant 0 : index
    %310 = vector.load %arg9[%c0_59, %c0_60] : memref<2x5xf32, #tpu.memory_space<vmem>>, vector<2x5xf32>
    tpu.vector_store %arg9[%c0_59, %c0_60], %309 {strides = array<i32>} : memref<2x5xf32, #tpu.memory_space<vmem>>, vector<2x5xf32>,
    return
  }
  func.func @transform_0(%arg0: i32) -> (i32, i32, i32) {
    %c0_i32 = arith.constant 0 : i32
    %c0_i32_0 = arith.constant 0 : i32
    %c0_i32_1 = arith.constant 0 : i32
    return %arg0, %c0_i32, %c0_i32_0 : i32, i32, i32
  }
  func.func @transform_1(%arg0: i32) -> (i32, i32) {
    %c0_i32 = arith.constant 0 : i32
    %c0_i32_0 = arith.constant 0 : i32
    %c0_i32_1 = arith.constant 0 : i32
    return %c0_i32, %c0_i32_0 : i32, i32
  }
  func.func @transform_2(%arg0: i32) -> (i32, i32) {
    %c0_i32 = arith.constant 0 : i32
    %c0_i32_0 = arith.constant 0 : i32
    %c0_i32_1 = arith.constant 0 : i32
    return %c0_i32, %c0_i32_0 : i32, i32
  }
  func.func @transform_3(%arg0: i32) -> (i32, i32) {
    %c0_i32 = arith.constant 0 : i32
    %c0_i32_0 = arith.constant 0 : i32
    %c0_i32_1 = arith.constant 0 : i32
    return %c0_i32, %c0_i32_0 : i32, i32
  }
  func.func @transform_4(%arg0: i32) -> (i32, i32) {
    %c0_i32 = arith.constant 0 : i32
    %c0_i32_0 = arith.constant 0 : i32
    %c0_i32_1 = arith.constant 0 : i32
    return %c0_i32, %c0_i32_0 : i32, i32
  }
  func.func @transform_5(%arg0: i32) -> (i32, i32) {
    %c0_i32 = arith.constant 0 : i32
    %c0_i32_0 = arith.constant 0 : i32
    %c0_i32_1 = arith.constant 0 : i32
    return %c0_i32, %c0_i32_0 : i32, i32
  }
  func.func @transform_6(%arg0: i32) -> (i32, i32) {
    %c0_i32 = arith.constant 0 : i32
    %c0_i32_0 = arith.constant 0 : i32
    %c0_i32_1 = arith.constant 0 : i32
    return %c0_i32, %c0_i32_0 : i32, i32
  }
  func.func @transform_7(%arg0: i32) -> (i32, i32) {
    %c0_i32 = arith.constant 0 : i32
    %c0_i32_0 = arith.constant 0 : i32
    %c0_i32_1 = arith.constant 0 : i32
    return %c0_i32, %c0_i32_0 : i32, i32
  }
  func.func @transform_8(%arg0: i32) -> (i32, i32) {
    %c0_i32 = arith.constant 0 : i32
    %c0_i32_0 = arith.constant 0 : i32
    return %arg0, %c0_i32 : i32, i32
  }
  func.func @transform_9(%arg0: i32) -> (i32, i32, i32) {
    %c0_i32 = arith.constant 0 : i32
    %c0_i32_0 = arith.constant 0 : i32
    %c0_i32_1 = arith.constant 0 : i32
    return %arg0, %c0_i32, %c0_i32_0 : i32, i32, i32
  }
}

</mosaic_0001>

<bundles_post_ra>
// kernel: lstm_classifier_forward.1
= control target key start
LH: loop header
LB: loop body
LE: loop exit
PB: predicated region body
PF: predicated region fallthrough
CT: control target
= control target key end

     0   :  { %vm56_vm0 = vcmask 1041409   ;;  %vm59_vm1 = vcmask 1042434   ;;  %vm62_vm2 = vcmask 1043459   ;;  %vm65_vm3 = vcmask 1044484   ;;  %s1356_s0 = inlined_call_operand.vmem [shape: f32[2,8,16], index: 0, kind: input, shape index: {}]   ;;  %s1357_s1 = inlined_call_operand.vmem [shape: f32[16,128], index: 1, kind: input, shape index: {}]   ;;  %s1358_s2 = inlined_call_operand.vmem [shape: f32[32,128], index: 2, kind: input, shape index: {}]   ;;  %s1359_s3 = inlined_call_operand.vmem [shape: f32[1,128], index: 3, kind: input, shape index: {}]   ;;  %s1360_s4 = inlined_call_operand.vmem [shape: f32[32,5], index: 4, kind: input, shape index: {}]   ;;  %s1361_s5 = inlined_call_operand.vmem [shape: f32[1,5], index: 5, kind: input, shape index: {}]   ;;  %s1362_s6 = inlined_call_operand.vmem [shape: f32[32,3], index: 6, kind: input, shape index: {}]   ;;  %s1363_s7 = inlined_call_operand.vmem [shape: f32[1,3], index: 7, kind: input, shape index: {}]   ;;  %s1364_s8 = inlined_call_operand.hbm [shape: f32[2,5], index: 8, kind: output, shape index: {0}]   ;;  %s1365_s9 = inlined_call_operand.vmem [shape: f32[2,8,3], index: 9, kind: output, shape index: {1}]  }
   0x1   :  { %v135_v0 = vld [vmem:[%s1358_s2 + $0x18] sm:$0xff]  ;;  %v51_v1 = vld [vmem:[%s1357_s1 + $0x8] sm:$0xff]  ;;  %v134_v2 = vld [vmem:[%s1358_s2 + $0x10] sm:$0xff] }
   0x2   :  { %152 = vmatpush.msra.mxu1 %v135_v0  ;;  %109 = vmatpush.msra.mxu0 %v51_v1  ;;  %v50_v3 = vld [vmem:[%s1357_s1] sm:$0xff]  ;;  %v133_v5 = vld [vmem:[%s1358_s2 + $0x8] sm:$0xff] }
   0x3   :  { %v1132_v4 = vld [vmem:[%s1356_s0] sm:$0xff]  ;;  %v1140_v6 = vld [vmem:[%s1356_s0 + $0x8] sm:$0xff]  ;;  %282 = vmatpush.msra.mxu3 %v135_v0  ;;  %412 = vmatpush.msra.mxu2 %v135_v0 }
   0x4   :  { %v922_v7 = vrot.slane %v1132_v4, 7  ;;  %153 = vmatpush.msra.mxu1 %v134_v2  ;;  %110 = vmatpush.msra.mxu0 %v50_v3  ;;  %v49_v8 = vrot.slane %v1140_v6, 7  ;;  %v923_v9 = vrot.slane %v1140_v6, 6  ;;  %v924_v10 = vrot.slane %v1132_v4, 6  ;;  %v132_v11 = vld [vmem:[%s1358_s2] sm:$0xff] }
   0x5   :  { %283 = vmatpush.msra.mxu3 %v134_v2  ;;  %v925_v13 = vrot.slane %v1140_v6, 5  ;;  %413 = vmatpush.msra.mxu2 %v134_v2 }
   0x6   :  { %217 = vmatpush.msrb.mxu0 %v135_v0  ;;  %154 = vmatpush.msra.mxu1 %v133_v5  ;;  %v57_v12 = vsel %vm56_vm0, %v49_v8, %v1132_v4 }
   0x7   :  { %15 = vsyncpa [#allocation3], 0  ;;  %v60_v14 = vsel %vm59_vm1, %v922_v7, %v57_v12  ;;  %vm68_vm4 = vcmask 1045509   ;;  %v926_v15 = vrot.slane %v1132_v4, 5  ;;  %284 = vmatpush.msra.mxu3 %v133_v5  ;;  %vm71_vm5 = vcmask 1046534   ;;  %414 = vmatpush.msra.mxu2 %v133_v5  ;;  %s1064_s24 = smov 64  }
   0x8   :  { %218 = vmatpush.msrb.mxu0 %v134_v2  ;;  %v63_v16 = vsel %vm62_vm2, %v923_v9, %v60_v14  ;;  %v927_v17 = vrot.slane %v1140_v6, 4  ;;  %155 = vmatpush.msra.mxu1 %v132_v11  ;;  %vm74_vm6 = vcmask 1047559   ;;  %v1063_v19 = vmov 0.0   ;;  %v1166_v23 = vld [vmem:[%s1359_s3] ss:$0 sm:$0xff]  ;;  %s1065_s3 = smov 32  }
   0x9   :  { %v66_v18 = vsel %vm65_vm3, %v924_v10, %v63_v16  ;;  %156 = vmatmul.f32.vlgmr.msra.gmra.mxu1 %v1063_v19  ;;  %vm90_vm7 = vcmask 130048   ;;  %285 = vmatpush.msra.mxu3 %v132_v11  ;;  %v42_v48 = vrot.slane %v1132_v4, 4  ;;  %v928_v49 = vrot.slane %v1140_v6, 11  ;;  %s909_s23 = sshll.u32 %s1364_s8, 4  ;;  %s910_s23 = int_to_ptr.hbm [resolvable:$true] %s909_s23 }
   0xa   :  { %219 = vmatpush.msrb.mxu0 %v133_v5  ;;  %v69_v20 = vsel %vm68_vm4, %v925_v13, %v66_v18  ;;  %347 = vmatpush.msrb.mxu1 %v135_v0  ;;  %v929_v50 = vrot.slane %v1132_v4, 11  ;;  %v930_v51 = vrot.slane %v1140_v6, 10  ;;  %v931_v52 = vrot.slane %v1132_v4, 10 }
   0xb   :  { %v72_v21 = vsel %vm71_vm5, %v926_v15, %v69_v20  ;;  %415 = vmatpush.msra.mxu2 %v132_v11  ;;  %477 = vmatpush.msrb.mxu3 %v135_v0  ;;  %v77_v53 = vsel %vm56_vm0, %v928_v49, %v42_v48  ;;  %v932_v54 = vrot.slane %v1140_v6, 9  ;;  %v933_v56 = vrot.slane %v1132_v4, 9 }
   0xc   :  { %220 = vmatpush.msrb.mxu0 %v132_v11  ;;  %v75_v22 = vsel %vm74_vm6, %v927_v17, %v72_v21  ;;  %348 = vmatpush.msrb.mxu1 %v134_v2  ;;  %v79_v55 = vsel %vm59_vm1, %v929_v50, %v77_v53  ;;  %v88_v58 = vrot.slane %v49_v8, 1  ;;  %vm136_vm12 = vcmask 261120  }
   0xd   :  { %934 = vmatmul.msk.f32.vlgmr.msra.gmra.mxu0 %vm90_vm7, %v75_v22  ;;  %478 = vmatpush.msrb.mxu3 %v134_v2  ;;  %v81_v57 = vsel %vm62_vm2, %v930_v51, %v79_v55 }
   0xe   :  { %349 = vmatpush.msrb.mxu1 %v133_v5  ;;  %542 = vmatpush.msra.mxu0 %v135_v0  ;;  %v83_v59 = vsel %vm65_vm3, %v931_v52, %v81_v57 }
   0xf   :  { %479 = vmatpush.msrb.mxu3 %v133_v5  ;;  %v85_v60 = vsel %vm68_vm4, %v932_v54, %v83_v59  ;;  %vm656_vm4 = vcmask 1040384  }
  0x10   :  { %350 = vmatpush.msrb.mxu1 %v132_v11  ;;  %543 = vmatpush.msra.mxu0 %v134_v2  ;;  %v87_v61 = vsel %vm71_vm5, %v933_v56, %v85_v60  ;;  %vm663_vm5 = vcmask 1042433  }
  0x11   :  { %480 = vmatpush.msrb.mxu3 %v132_v11  ;;  %v89_v62 = vsel %vm74_vm6, %v88_v58, %v87_v61  ;;  %vm659_vm6 = vcmask 1041408  }
  0x12   :  { %607 = vmatpush.msra.mxu1 %v135_v0  ;;  %544 = vmatpush.msra.mxu0 %v133_v5 }
  0x14   :  { %608 = vmatpush.msra.mxu1 %v134_v2  ;;  %545 = vmatpush.msra.mxu0 %v132_v11 }
  0x15   :  { %935 = vmatmul.msk.f32.gmra.mxu0 %vm90_vm7, %v89_v62 }
  0x16   :  { %609 = vmatpush.msra.mxu1 %v133_v5 }
  0x18   :  { %610 = vmatpush.msra.mxu1 %v132_v11 }
  0x86   :  { %v157_v25 = vpop.f32.mrf.mxu1 }
  0x8a   :  { %v112_v24 = vpop.f32.mrf.mxu0 }
  0x8b   :  { %v1169_v26 = vadd.f32 %v1166_v23, %v112_v24 }
  0x8d   :  { %v160_v27 = vadd.f32 %v157_v25, %v1169_v26  ;;  %v120_v4 = vrot.slane %v1169_v26, 2  ;;  %v121_v57 = vrot.slane %v1169_v26, 4 }
  0x8f   :  { %961 = vtanh.f32 %v160_v27  ;;  %v936_v29 = vmul.f32 -1.442695, %v160_v27 }
  0x91   :  { %963 = vpow2.f32 %v936_v29 }
  0x92   :  { %v1194_v3 = vpop.f32.mrf.mxu0 }
  0x95   :  { %v962_v28 = vpop.eup %961 }
  0x96   :  { %183 = vrot.lane.b32.xlu0 %v962_v28, %s1064_s24 }
  0x97   :  { %v964_v30 = vpop.eup %963 }
  0x98   :  { %v164_v31 = vadd.f32 1.0, %v964_v30 }
  0x9a   :  { %965 = vrcp.f32 %v164_v31  ;;  %v176_v37 = vand.u32 2147483648, %v164_v31  ;;  %vm170_vm9 = vweird.f32 %v164_v31  ;;  %v174_v38 = vand.u32 2147483647, %v164_v31 }
  0x9c   :  { %v177_v40 = vor.u32 1.1754944e-38, %v176_v37  ;;  %vm175_vm11 = vcmp.eq.f32.partialorder %v174_v38, 8.507059e+37 }
  0xa0   :  { %v966_v32 = vpop.eup %965 }
  0xa1   :  { %v166_v33 = vmul.f32 %v966_v32, %v164_v31  ;;  %vm171_vm8 = vweird.f32 %v966_v32 }
  0xa2   :  { %vm172_vm10 = vmor %vm170_vm9, %vm171_vm8 }
  0xa3   :  { %v167_v34 = vsub.f32 1.0, %v166_v33 }
  0xa5   :  { %v168_v35 = vmul.f32 %v966_v32, %v167_v34 }
  0xa7   :  { %v169_v36 = vadd.f32 %v966_v32, %v168_v35 }
  0xa9   :  { %v173_v39 = vsel %vm172_vm10, %v966_v32, %v169_v36 }
  0xaa   :  { %v178_v42 = vsel %vm175_vm11, %v177_v40, %v173_v39 }
  0xab   :  { %v181_v44 = vmul.f32 0.0, %v178_v42 }
 0x108   :  { %v184_v41 = vpop.permute.xlu0 %183 }
 0x109   :  { %v186_v43 = vmul.f32 %v184_v41, %v178_v42 }
 0x10b   :  { %188 = vrot.lane.b32.xlu0 %v186_v43, %s1065_s3 }
 0x17d   :  { %v189_v45 = vpop.permute.xlu0 %188 }
 0x17e   :  { %v191_v46 = vadd.f32 %v189_v45, %v181_v44 }
 0x180   :  { %967 = vtanh.f32 %v191_v46 }
 0x186   :  { %v968_v47 = vpop.eup %967 }
 0x187   :  { %194 = vrot.lane.b32.xlu1 %v968_v47, %s1064_s24 }
 0x1f9   :  { %v195_v63 = vpop.permute.xlu1 %194 }
 0x1fa   :  { %v197_v0 = vmul.f32 %v195_v63, %v178_v42 }
 0x1fc   :  { %199 = vst [vmem:[#allocation1] ss:$4 sm:$0xff] %v197_v0  ;;  %v653_v29 = vrot.slane %v197_v0, 1  ;;  %v654_v30 = vrot.slane %v197_v0, 2  ;;  %v655_v31 = vrot.slane %v197_v0, 3 }
 0x1fe   :  { %v661_v34 = vsel %vm56_vm0, %v197_v0, %v653_v29  ;;  %v662_v38 = vsel %vm62_vm2, %v654_v30, %v655_v31  ;;  %v657_v39 = vsel %vm656_vm4, %v197_v0, %v653_v29  ;;  %v658_v40 = vsel %vm59_vm1, %v654_v30, %v655_v31 }
 0x1ff   :  { %v660_v50 = vsel %vm659_vm6, %v657_v39, %v658_v40 }
 0x203   :  { %v200_v1 = vld.sshfl [vmem:[#allocation1] sm:$0xff pattern:$0x73625140] }
 0x204   :  { %201 = vrot.lane.b32.xlu1 %v200_v1, %s1065_s3 }
 0x276   :  { %v202_v2 = vpop.permute.xlu1 %201 }
 0x277   :  { %937 = vmatmul.msk.f32.vlgmr.msrb.gmra.mxu0 %vm136_vm12, %v202_v2 }
 0x2f4   :  { %v222_v5 = vpop.f32.mrf.mxu0 }
 0x2f5   :  { %v225_v6 = vadd.f32 %v222_v5, %v120_v4 }
 0x2f7   :  { %969 = vtanh.f32 %v225_v6  ;;  %v938_v8 = vmul.f32 -1.442695, %v225_v6 }
 0x2f9   :  { %971 = vpow2.f32 %v938_v8 }
 0x2fd   :  { %v970_v7 = vpop.eup %969 }
 0x2fe   :  { %248 = vrot.lane.b32.xlu2 %v970_v7, %s1064_s24 }
 0x2ff   :  { %v972_v9 = vpop.eup %971 }
 0x300   :  { %v229_v10 = vadd.f32 1.0, %v972_v9 }
 0x302   :  { %973 = vrcp.f32 %v229_v10  ;;  %v241_v16 = vand.u32 2147483648, %v229_v10  ;;  %vm235_vm14 = vweird.f32 %v229_v10  ;;  %v239_v17 = vand.u32 2147483647, %v229_v10 }
 0x304   :  { %v242_v19 = vor.u32 1.1754944e-38, %v241_v16  ;;  %vm240_vm3 = vcmp.eq.f32.partialorder %v239_v17, 8.507059e+37 }
 0x308   :  { %v974_v11 = vpop.eup %973 }
 0x309   :  { %v231_v12 = vmul.f32 %v974_v11, %v229_v10  ;;  %vm236_vm13 = vweird.f32 %v974_v11 }
 0x30a   :  { %vm237_vm15 = vmor %vm235_vm14, %vm236_vm13 }
 0x30b   :  { %v232_v13 = vsub.f32 1.0, %v231_v12 }
 0x30d   :  { %v233_v14 = vmul.f32 %v974_v11, %v232_v13 }
 0x30f   :  { %v234_v15 = vadd.f32 %v974_v11, %v233_v14 }
 0x311   :  { %v238_v18 = vsel %vm237_vm15, %v974_v11, %v234_v15 }
 0x312   :  { %v243_v21 = vsel %vm240_vm3, %v242_v19, %v238_v18  ;;  %vm771_vm3 = vcmask 1042432  }
 0x313   :  { %v246_v24 = vmul.f32 %v243_v21, %v191_v46  ;;  %v664_v46 = vsel %vm663_vm5, %v661_v34, %v662_v38 }
 0x314   :  { %v665_v52 = vrot.slane %v664_v46, 1 }
 0x358   :  { %v249_v20 = vpop.permute.xlu2 %248 }
 0x359   :  { %v251_v22 = vmul.f32 %v249_v20, %v243_v21 }
 0x35b   :  { %253 = vrot.lane.b32.xlu2 %v251_v22, %s1065_s3 }
 0x3b5   :  { %v254_v25 = vpop.permute.xlu2 %253 }
 0x3b6   :  { %v1199_v27 = vadd.f32 %v254_v25, %v246_v24 }
 0x3b8   :  { %975 = vtanh.f32 %v1199_v27 }
 0x3be   :  { %v976_v28 = vpop.eup %975 }
 0x3bf   :  { %259 = vrot.lane.b32.xlu0 %v976_v28, %s1064_s24 }
 0x431   :  { %v260_v32 = vpop.permute.xlu0 %259 }
 0x432   :  { %v262_v33 = vmul.f32 %v260_v32, %v243_v21 }
 0x434   :  { %264 = vst [vmem:[#allocation1] ss:$4 sm:$0xff] %v262_v33  ;;  %v668_v35 = vrot.slane %v262_v33, 1  ;;  %v669_v36 = vrot.slane %v262_v33, 2  ;;  %v670_v37 = vrot.slane %v262_v33, 3 }
 0x436   :  { %v671_v41 = vsel %vm656_vm4, %v262_v33, %v668_v35  ;;  %v674_v42 = vsel %vm56_vm0, %v262_v33, %v668_v35  ;;  %v672_v43 = vsel %vm59_vm1, %v669_v36, %v670_v37  ;;  %v675_v44 = vsel %vm62_vm2, %v669_v36, %v670_v37 }
 0x437   :  { %v673_v45 = vsel %vm659_vm6, %v671_v41, %v672_v43  ;;  %v676_v47 = vsel %vm663_vm5, %v674_v42, %v675_v44  ;;  %v122_v37 = vrot.slane %v1169_v26, 6 }
 0x438   :  { %v739_v48 = vperm.slane %v673_v45, 0  ;;  %v677_v49 = vrot.slane %v676_v47, 1 }
 0x43a   :  { %v767_v51 = vsel %vm656_vm4, %v660_v50, %v739_v48  ;;  %v740_v53 = vperm.slane %v677_v49, 0 }
 0x43b   :  { %v265_v54 = vld.sshfl [vmem:[#allocation1] sm:$0xff pattern:$0x73625140] }
 0x43c   :  { %266 = vrot.lane.b32.xlu1 %v265_v54, %s1065_s3  ;;  %v768_v55 = vsel %vm656_vm4, %v665_v52, %v740_v53 }
 0x4ae   :  { %v267_v56 = vpop.permute.xlu1 %266 }
 0x4af   :  { %939 = vmatmul.msk.f32.vlgmr.msra.gmra.mxu3 %vm136_vm12, %v267_v56 }
 0x532   :  { %v287_v58 = vpop.f32.mrf.mxu3 }
 0x533   :  { %v290_v59 = vadd.f32 %v287_v58, %v121_v57 }
 0x535   :  { %977 = vtanh.f32 %v290_v59  ;;  %v940_v61 = vmul.f32 -1.442695, %v290_v59 }
 0x537   :  { %979 = vpow2.f32 %v940_v61 }
 0x53b   :  { %v978_v60 = vpop.eup %977 }
 0x53c   :  { %313 = vrot.lane.b32.xlu2 %v978_v60, %s1064_s24 }
 0x53d   :  { %v980_v62 = vpop.eup %979 }
 0x53e   :  { %v294_v63 = vadd.f32 1.0, %v980_v62 }
 0x540   :  { %981 = vrcp.f32 %v294_v63  ;;  %v306_v6 = vand.u32 2147483648, %v294_v63  ;;  %vm300_vm8 = vweird.f32 %v294_v63  ;;  %v304_v7 = vand.u32 2147483647, %v294_v63 }
 0x542   :  { %v307_v9 = vor.u32 1.1754944e-38, %v306_v6  ;;  %vm305_vm10 = vcmp.eq.f32.partialorder %v304_v7, 8.507059e+37 }
 0x546   :  { %v982_v0 = vpop.eup %981 }
 0x547   :  { %v296_v1 = vmul.f32 %v982_v0, %v294_v63  ;;  %vm301_vm7 = vweird.f32 %v982_v0 }
 0x548   :  { %vm302_vm9 = vmor %vm300_vm8, %vm301_vm7 }
 0x549   :  { %v297_v2 = vsub.f32 1.0, %v296_v1 }
 0x54b   :  { %v298_v4 = vmul.f32 %v982_v0, %v297_v2 }
 0x54d   :  { %v299_v5 = vadd.f32 %v982_v0, %v298_v4 }
 0x54f   :  { %v303_v8 = vsel %vm302_vm9, %v982_v0, %v299_v5 }
 0x550   :  { %v308_v11 = vsel %vm305_vm10, %v307_v9, %v303_v8 }
 0x551   :  { %v311_v13 = vmul.f32 %v308_v11, %v1199_v27 }
 0x596   :  { %v314_v10 = vpop.permute.xlu2 %313 }
 0x597   :  { %v316_v12 = vmul.f32 %v314_v10, %v308_v11 }
 0x599   :  { %318 = vrot.lane.b32.xlu0 %v316_v12, %s1065_s3 }
 0x60b   :  { %v319_v14 = vpop.permute.xlu0 %318 }
 0x60c   :  { %v321_v15 = vadd.f32 %v319_v14, %v311_v13  ;;  %v1248_v14 = vadd.f32 %v1166_v23, %v1194_v3 }
 0x60e   :  { %983 = vtanh.f32 %v321_v15 }
 0x614   :  { %v984_v16 = vpop.eup %983 }
 0x615   :  { %324 = vrot.lane.b32.xlu1 %v984_v16, %s1064_s24 }
 0x687   :  { %v325_v17 = vpop.permute.xlu1 %324 }
 0x688   :  { %v327_v18 = vmul.f32 %v325_v17, %v308_v11 }
 0x68a   :  { %329 = vst [vmem:[#allocation1] ss:$4 sm:$0xff] %v327_v18  ;;  %v678_v19 = vrot.slane %v327_v18, 1  ;;  %v679_v20 = vrot.slane %v327_v18, 2  ;;  %v680_v21 = vrot.slane %v327_v18, 3 }
 0x68c   :  { %v681_v22 = vsel %vm656_vm4, %v327_v18, %v678_v19  ;;  %v684_v24 = vsel %vm56_vm0, %v327_v18, %v678_v19  ;;  %v682_v25 = vsel %vm59_vm1, %v679_v20, %v680_v21  ;;  %v685_v27 = vsel %vm62_vm2, %v679_v20, %v680_v21 }
 0x68d   :  { %v683_v28 = vsel %vm659_vm6, %v681_v22, %v682_v25  ;;  %v686_v29 = vsel %vm663_vm5, %v684_v24, %v685_v27 }
 0x68e   :  { %v743_v30 = vperm.slane %v683_v28, 0  ;;  %v687_v31 = vrot.slane %v686_v29, 1 }
 0x690   :  { %v769_v32 = vsel %vm659_vm6, %v767_v51, %v743_v30  ;;  %v744_v33 = vperm.slane %v687_v31, 0 }
 0x691   :  { %v330_v34 = vld.sshfl [vmem:[#allocation1] sm:$0xff pattern:$0x73625140] }
 0x692   :  { %331 = vrot.lane.b32.xlu2 %v330_v34, %s1065_s3  ;;  %v770_v35 = vsel %vm659_vm6, %v768_v55, %v744_v33 }
 0x6ec   :  { %v332_v36 = vpop.permute.xlu2 %331 }
 0x6ed   :  { %941 = vmatmul.msk.f32.vlgmr.msrb.gmra.mxu1 %vm136_vm12, %v332_v36 }
 0x76a   :  { %v352_v38 = vpop.f32.mrf.mxu1 }
 0x76b   :  { %v355_v39 = vadd.f32 %v352_v38, %v122_v37 }
 0x76d   :  { %985 = vtanh.f32 %v355_v39  ;;  %v942_v41 = vmul.f32 -1.442695, %v355_v39 }
 0x76f   :  { %987 = vpow2.f32 %v942_v41 }
 0x773   :  { %v986_v40 = vpop.eup %985 }
 0x774   :  { %378 = vrot.lane.b32.xlu0 %v986_v40, %s1064_s24 }
 0x775   :  { %v988_v42 = vpop.eup %987 }
 0x776   :  { %v359_v43 = vadd.f32 1.0, %v988_v42 }
 0x778   :  { %989 = vrcp.f32 %v359_v43  ;;  %v371_v49 = vand.u32 2147483648, %v359_v43  ;;  %vm365_vm13 = vweird.f32 %v359_v43  ;;  %v369_v26 = vand.u32 2147483647, %v359_v43 }
 0x77a   :  { %v372_v51 = vor.u32 1.1754944e-38, %v371_v49  ;;  %vm370_vm15 = vcmp.eq.f32.partialorder %v369_v26, 8.507059e+37 }
 0x77e   :  { %v990_v44 = vpop.eup %989 }
 0x77f   :  { %v361_v45 = vmul.f32 %v990_v44, %v359_v43  ;;  %vm366_vm11 = vweird.f32 %v990_v44 }
 0x780   :  { %vm367_vm14 = vmor %vm365_vm13, %vm366_vm11  ;;  %vm774_vm11 = vcmask 1043456  }
 0x781   :  { %v362_v46 = vsub.f32 1.0, %v361_v45 }
 0x783   :  { %v363_v47 = vmul.f32 %v990_v44, %v362_v46 }
 0x785   :  { %v364_v48 = vadd.f32 %v990_v44, %v363_v47 }
 0x787   :  { %v368_v50 = vsel %vm367_vm14, %v990_v44, %v364_v48 }
 0x788   :  { %v373_v53 = vsel %vm370_vm15, %v372_v51, %v368_v50 }
 0x789   :  { %v376_v55 = vmul.f32 %v373_v53, %v321_v15 }
 0x7e6   :  { %v379_v52 = vpop.permute.xlu0 %378 }
 0x7e7   :  { %v381_v54 = vmul.f32 %v379_v52, %v373_v53 }
 0x7e9   :  { %383 = vrot.lane.b32.xlu1 %v381_v54, %s1065_s3  ;;  %v123_v54 = vrot.slane %v1248_v14, 2 }
 0x85b   :  { %v384_v56 = vpop.permute.xlu1 %383 }
 0x85c   :  { %v386_v57 = vadd.f32 %v384_v56, %v376_v55 }
 0x85e   :  { %991 = vtanh.f32 %v386_v57 }
 0x864   :  { %v992_v58 = vpop.eup %991 }
 0x865   :  { %389 = vrot.lane.b32.xlu2 %v992_v58, %s1064_s24 }
 0x8bf   :  { %v390_v59 = vpop.permute.xlu2 %389 }
 0x8c0   :  { %v392_v60 = vmul.f32 %v390_v59, %v373_v53 }
 0x8c2   :  { %394 = vst [vmem:[#allocation1] ss:$4 sm:$0xff] %v392_v60  ;;  %v688_v61 = vrot.slane %v392_v60, 1  ;;  %v689_v62 = vrot.slane %v392_v60, 2  ;;  %v690_v63 = vrot.slane %v392_v60, 3 }
 0x8c4   :  { %v691_v0 = vsel %vm656_vm4, %v392_v60, %v688_v61  ;;  %v692_v1 = vsel %vm59_vm1, %v689_v62, %v690_v63  ;;  %v694_v2 = vsel %vm56_vm0, %v392_v60, %v688_v61  ;;  %v695_v4 = vsel %vm62_vm2, %v689_v62, %v690_v63 }
 0x8c5   :  { %v693_v5 = vsel %vm659_vm6, %v691_v0, %v692_v1  ;;  %v696_v6 = vsel %vm663_vm5, %v694_v2, %v695_v4 }
 0x8c6   :  { %v747_v7 = vperm.slane %v693_v5, 0  ;;  %v697_v8 = vrot.slane %v696_v6, 1 }
 0x8c8   :  { %v772_v9 = vsel %vm771_vm3, %v769_v32, %v747_v7  ;;  %v748_v10 = vperm.slane %v697_v8, 0 }
 0x8c9   :  { %v395_v11 = vld.sshfl [vmem:[#allocation1] sm:$0xff pattern:$0x73625140] }
 0x8ca   :  { %396 = vrot.lane.b32.xlu0 %v395_v11, %s1065_s3  ;;  %v773_v12 = vsel %vm771_vm3, %v770_v35, %v748_v10 }
 0x93c   :  { %v397_v13 = vpop.permute.xlu0 %396 }
 0x93d   :  { %943 = vmatmul.msk.f32.vlgmr.msra.gmra.mxu2 %vm136_vm12, %v397_v13 }
 0x9c0   :  { %v417_v15 = vpop.f32.mrf.mxu2 }
 0x9c1   :  { %v420_v16 = vadd.f32 %v417_v15, %v1248_v14 }
 0x9c3   :  { %993 = vtanh.f32 %v420_v16  ;;  %v944_v18 = vmul.f32 -1.442695, %v420_v16 }
 0x9c5   :  { %995 = vpow2.f32 %v944_v18 }
 0x9c9   :  { %v994_v17 = vpop.eup %993 }
 0x9ca   :  { %443 = vrot.lane.b32.xlu1 %v994_v17, %s1064_s24 }
 0x9cb   :  { %v996_v19 = vpop.eup %995 }
 0x9cc   :  { %v424_v20 = vadd.f32 1.0, %v996_v19 }
 0x9ce   :  { %997 = vrcp.f32 %v424_v20  ;;  %v436_v23 = vand.u32 2147483648, %v424_v20  ;;  %vm430_vm8 = vweird.f32 %v424_v20  ;;  %v434_v3 = vand.u32 2147483647, %v424_v20 }
 0x9d0   :  { %v437_v29 = vor.u32 1.1754944e-38, %v436_v23  ;;  %vm435_vm10 = vcmp.eq.f32.partialorder %v434_v3, 8.507059e+37 }
 0x9d4   :  { %v998_v21 = vpop.eup %997 }
 0x9d5   :  { %v426_v22 = vmul.f32 %v998_v21, %v424_v20  ;;  %vm431_vm7 = vweird.f32 %v998_v21 }
 0x9d6   :  { %vm432_vm9 = vmor %vm430_vm8, %vm431_vm7  ;;  %vm777_vm7 = vcmask 1044480  }
 0x9d7   :  { %v427_v24 = vsub.f32 1.0, %v426_v22 }
 0x9d9   :  { %v428_v25 = vmul.f32 %v998_v21, %v427_v24 }
 0x9db   :  { %v429_v27 = vadd.f32 %v998_v21, %v428_v25 }
 0x9dd   :  { %v433_v28 = vsel %vm432_vm9, %v998_v21, %v429_v27 }
 0x9de   :  { %v438_v31 = vsel %vm435_vm10, %v437_v29, %v433_v28 }
 0x9df   :  { %v441_v33 = vmul.f32 %v438_v31, %v386_v57 }
 0xa3c   :  { %v444_v30 = vpop.permute.xlu1 %443 }
 0xa3d   :  { %v446_v32 = vmul.f32 %v444_v30, %v438_v31 }
 0xa3f   :  { %448 = vrot.lane.b32.xlu2 %v446_v32, %s1065_s3 }
 0xa99   :  { %v449_v34 = vpop.permute.xlu2 %448 }
 0xa9a   :  { %v451_v35 = vadd.f32 %v449_v34, %v441_v33  ;;  %v124_v33 = vrot.slane %v1248_v14, 4 }
 0xa9c   :  { %999 = vtanh.f32 %v451_v35 }
 0xaa2   :  { %v1000_v36 = vpop.eup %999 }
 0xaa3   :  { %454 = vrot.lane.b32.xlu0 %v1000_v36, %s1064_s24 }
 0xb15   :  { %v455_v37 = vpop.permute.xlu0 %454 }
 0xb16   :  { %v457_v38 = vmul.f32 %v455_v37, %v438_v31 }
 0xb18   :  { %459 = vst [vmem:[#allocation1] ss:$4 sm:$0xff] %v457_v38  ;;  %v698_v39 = vrot.slane %v457_v38, 1  ;;  %v699_v40 = vrot.slane %v457_v38, 2  ;;  %v700_v41 = vrot.slane %v457_v38, 3 }
 0xb1a   :  { %v701_v42 = vsel %vm656_vm4, %v457_v38, %v698_v39  ;;  %v702_v43 = vsel %vm59_vm1, %v699_v40, %v700_v41  ;;  %v704_v44 = vsel %vm56_vm0, %v457_v38, %v698_v39  ;;  %v705_v45 = vsel %vm62_vm2, %v699_v40, %v700_v41 }
 0xb1b   :  { %v703_v46 = vsel %vm659_vm6, %v701_v42, %v702_v43  ;;  %v706_v47 = vsel %vm663_vm5, %v704_v44, %v705_v45 }
 0xb1c   :  { %v751_v48 = vperm.slane %v703_v46, 0  ;;  %v707_v49 = vrot.slane %v706_v47, 1 }
 0xb1e   :  { %v775_v26 = vsel %vm774_vm11, %v772_v9, %v751_v48  ;;  %v752_v50 = vperm.slane %v707_v49, 0 }
 0xb1f   :  { %v460_v51 = vld.sshfl [vmem:[#allocation1] sm:$0xff pattern:$0x73625140] }
 0xb20   :  { %461 = vrot.lane.b32.xlu1 %v460_v51, %s1065_s3  ;;  %v776_v52 = vsel %vm774_vm11, %v773_v12, %v752_v50 }
 0xb92   :  { %v462_v53 = vpop.permute.xlu1 %461 }
 0xb93   :  { %945 = vmatmul.msk.f32.vlgmr.msrb.gmra.mxu3 %vm136_vm12, %v462_v53 }
 0xc16   :  { %v482_v55 = vpop.f32.mrf.mxu3 }
 0xc17   :  { %v485_v56 = vadd.f32 %v482_v55, %v123_v54 }
 0xc19   :  { %1001 = vtanh.f32 %v485_v56  ;;  %v946_v58 = vmul.f32 -1.442695, %v485_v56 }
 0xc1b   :  { %1003 = vpow2.f32 %v946_v58 }
 0xc1f   :  { %v1002_v57 = vpop.eup %1001 }
 0xc20   :  { %508 = vrot.lane.b32.xlu2 %v1002_v57, %s1064_s24 }
 0xc21   :  { %v1004_v59 = vpop.eup %1003 }
 0xc22   :  { %v489_v60 = vadd.f32 1.0, %v1004_v59 }
 0xc24   :  { %1005 = vrcp.f32 %v489_v60  ;;  %v501_v2 = vand.u32 2147483648, %v489_v60  ;;  %vm495_vm14 = vweird.f32 %v489_v60  ;;  %v499_v4 = vand.u32 2147483647, %v489_v60 }
 0xc26   :  { %v502_v6 = vor.u32 1.1754944e-38, %v501_v2  ;;  %vm500_vm3 = vcmp.eq.f32.partialorder %v499_v4, 8.507059e+37 }
 0xc2a   :  { %v1006_v61 = vpop.eup %1005 }
 0xc2b   :  { %v491_v62 = vmul.f32 %v1006_v61, %v489_v60  ;;  %vm496_vm13 = vweird.f32 %v1006_v61 }
 0xc2c   :  { %vm497_vm15 = vmor %vm495_vm14, %vm496_vm13  ;;  %vm780_vm13 = vcmask 1045504  }
 0xc2d   :  { %v492_v63 = vsub.f32 1.0, %v491_v62 }
 0xc2f   :  { %v493_v0 = vmul.f32 %v1006_v61, %v492_v63 }
 0xc31   :  { %v494_v1 = vadd.f32 %v1006_v61, %v493_v0 }
 0xc33   :  { %v498_v5 = vsel %vm497_vm15, %v1006_v61, %v494_v1 }
 0xc34   :  { %v503_v8 = vsel %vm500_vm3, %v502_v6, %v498_v5 }
 0xc35   :  { %v506_v10 = vmul.f32 %v503_v8, %v451_v35 }
 0xc7a   :  { %v509_v7 = vpop.permute.xlu2 %508 }
 0xc7b   :  { %v511_v9 = vmul.f32 %v509_v7, %v503_v8 }
 0xc7d   :  { %513 = vrot.lane.b32.xlu0 %v511_v9, %s1065_s3 }
 0xcef   :  { %v514_v11 = vpop.permute.xlu0 %513 }
 0xcf0   :  { %v516_v12 = vadd.f32 %v514_v11, %v506_v10  ;;  %v125_v10 = vrot.slane %v1248_v14, 6 }
 0xcf2   :  { %1007 = vtanh.f32 %v516_v12 }
 0xcf8   :  { %v1008_v13 = vpop.eup %1007 }
 0xcf9   :  { %519 = vrot.lane.b32.xlu1 %v1008_v13, %s1064_s24 }
 0xd6b   :  { %v520_v15 = vpop.permute.xlu1 %519 }
 0xd6c   :  { %v522_v16 = vmul.f32 %v520_v15, %v503_v8 }
 0xd6e   :  { %524 = vst [vmem:[#allocation1] ss:$4 sm:$0xff] %v522_v16  ;;  %v708_v17 = vrot.slane %v522_v16, 1  ;;  %v709_v18 = vrot.slane %v522_v16, 2  ;;  %v710_v19 = vrot.slane %v522_v16, 3 }
 0xd70   :  { %v711_v20 = vsel %vm656_vm4, %v522_v16, %v708_v17  ;;  %v712_v21 = vsel %vm59_vm1, %v709_v18, %v710_v19  ;;  %v714_v22 = vsel %vm56_vm0, %v522_v16, %v708_v17  ;;  %v715_v24 = vsel %vm62_vm2, %v709_v18, %v710_v19 }
 0xd71   :  { %v713_v25 = vsel %vm659_vm6, %v711_v20, %v712_v21  ;;  %v716_v27 = vsel %vm663_vm5, %v714_v22, %v715_v24 }
 0xd72   :  { %v755_v23 = vperm.slane %v713_v25, 0  ;;  %v717_v3 = vrot.slane %v716_v27, 1 }
 0xd74   :  { %v778_v28 = vsel %vm777_vm7, %v775_v26, %v755_v23  ;;  %v756_v29 = vperm.slane %v717_v3, 0 }
 0xd75   :  { %v525_v30 = vld.sshfl [vmem:[#allocation1] sm:$0xff pattern:$0x73625140] }
 0xd76   :  { %526 = vrot.lane.b32.xlu2 %v525_v30, %s1065_s3  ;;  %v779_v31 = vsel %vm777_vm7, %v776_v52, %v756_v29 }
 0xdd0   :  { %v527_v32 = vpop.permute.xlu2 %526 }
 0xdd1   :  { %947 = vmatmul.msk.f32.vlgmr.msra.gmra.mxu0 %vm136_vm12, %v527_v32 }
 0xe4e   :  { %v547_v34 = vpop.f32.mrf.mxu0 }
 0xe4f   :  { %v550_v35 = vadd.f32 %v547_v34, %v124_v33  ;;  %v857_v33 = vld [vmem:[%s1360_s4 + $0x18] sm:$0xff]  ;;  %v856_v34 = vld [vmem:[%s1360_s4 + $0x10] sm:$0xff] }
 0xe50   :  { %880 = vmatpush.msra.mxu3 %v857_v33 }
 0xe51   :  { %1009 = vtanh.f32 %v550_v35  ;;  %v948_v37 = vmul.f32 -1.442695, %v550_v35  ;;  %v855_v35 = vld [vmem:[%s1360_s4 + $0x8] sm:$0xff] }
 0xe52   :  { %881 = vmatpush.msra.mxu3 %v856_v34 }
 0xe53   :  { %1011 = vpow2.f32 %v948_v37 }
 0xe54   :  { %882 = vmatpush.msra.mxu3 %v855_v35 }
 0xe57   :  { %v1010_v36 = vpop.eup %1009 }
 0xe58   :  { %573 = vrot.lane.b32.xlu0 %v1010_v36, %s1064_s24  ;;  %v854_v36 = vld [vmem:[%s1360_s4] sm:$0xff] }
 0xe59   :  { %v1012_v38 = vpop.eup %1011  ;;  %883 = vmatpush.msra.mxu3 %v854_v36 }
 0xe5a   :  { %v554_v39 = vadd.f32 1.0, %v1012_v38 }
 0xe5c   :  { %1013 = vrcp.f32 %v554_v39  ;;  %v566_v45 = vand.u32 2147483648, %v554_v39  ;;  %vm560_vm9 = vweird.f32 %v554_v39  ;;  %v564_v46 = vand.u32 2147483647, %v554_v39 }
 0xe5e   :  { %v567_v48 = vor.u32 1.1754944e-38, %v566_v45  ;;  %vm565_vm11 = vcmp.eq.f32.partialorder %v564_v46, 8.507059e+37 }
 0xe62   :  { %v1014_v40 = vpop.eup %1013 }
 0xe63   :  { %v556_v41 = vmul.f32 %v1014_v40, %v554_v39  ;;  %vm561_vm8 = vweird.f32 %v1014_v40 }
 0xe64   :  { %vm562_vm10 = vmor %vm560_vm9, %vm561_vm8  ;;  %vm783_vm8 = vcmask 1046528  }
 0xe65   :  { %v557_v42 = vsub.f32 1.0, %v556_v41 }
 0xe67   :  { %v558_v43 = vmul.f32 %v1014_v40, %v557_v42 }
 0xe69   :  { %v559_v44 = vadd.f32 %v1014_v40, %v558_v43 }
 0xe6b   :  { %v563_v47 = vsel %vm562_vm10, %v1014_v40, %v559_v44 }
 0xe6c   :  { %v568_v26 = vsel %vm565_vm11, %v567_v48, %v563_v47 }
 0xe6d   :  { %v571_v51 = vmul.f32 %v568_v26, %v516_v12 }
 0xeca   :  { %v574_v49 = vpop.permute.xlu0 %573 }
 0xecb   :  { %v576_v50 = vmul.f32 %v574_v49, %v568_v26 }
 0xecd   :  { %578 = vrot.lane.b32.xlu1 %v576_v50, %s1065_s3 }
 0xf3f   :  { %v579_v52 = vpop.permute.xlu1 %578 }
 0xf40   :  { %v581_v53 = vadd.f32 %v579_v52, %v571_v51 }
 0xf42   :  { %1015 = vtanh.f32 %v581_v53 }
 0xf48   :  { %v1016_v54 = vpop.eup %1015 }
 0xf49   :  { %584 = vrot.lane.b32.xlu2 %v1016_v54, %s1064_s24  ;;  %v788_v54 = vld [vmem:[%s1362_s6 + $0x10] sm:$0xff] }
 0xfa3   :  { %v585_v55 = vpop.permute.xlu2 %584 }
 0xfa4   :  { %v587_v56 = vmul.f32 %v585_v55, %v568_v26  ;;  %v787_v55 = vld [vmem:[%s1362_s6 + $0x8] sm:$0xff] }
 0xfa6   :  { %589 = vst [vmem:[#allocation1] ss:$4 sm:$0xff] %v587_v56  ;;  %v718_v57 = vrot.slane %v587_v56, 1  ;;  %v719_v58 = vrot.slane %v587_v56, 2  ;;  %v720_v59 = vrot.slane %v587_v56, 3 }
 0xfa8   :  { %v721_v60 = vsel %vm656_vm4, %v587_v56, %v718_v57  ;;  %v722_v61 = vsel %vm59_vm1, %v719_v58, %v720_v59  ;;  %v724_v62 = vsel %vm56_vm0, %v587_v56, %v718_v57  ;;  %v725_v63 = vsel %vm62_vm2, %v719_v58, %v720_v59  ;;  %v786_v56 = vld [vmem:[%s1362_s6] sm:$0xff] }
 0xfa9   :  { %v723_v0 = vsel %vm659_vm6, %v721_v60, %v722_v61  ;;  %v726_v1 = vsel %vm663_vm5, %v724_v62, %v725_v63  ;;  %v959_v60 = vld [vmem:[%s1361_s5] ss:$0 sm:$0xff]  ;;  %s1066_s5 = smov [#allocation2]  }
 0xfaa   :  { %v759_v2 = vperm.slane %v723_v0, 0  ;;  %v727_v4 = vrot.slane %v726_v1, 1  ;;  %v960_v0 = vld [vmem:[%s1363_s7] ss:$0 sm:$0xff]  ;;  %s907_s7 = sshll.u32 %s1066_s5, 4  ;;  %s908_s7 = int_to_ptr.vmem [resolvable:$true] %s907_s7 }
 0xfac   :  { %v1284_v5 = vsel %vm780_vm13, %v778_v28, %v759_v2  ;;  %v760_v6 = vperm.slane %v727_v4, 0 }
 0xfad   :  { %v590_v7 = vld.sshfl [vmem:[#allocation1] sm:$0xff pattern:$0x73625140] }
 0xfae   :  { %591 = vrot.lane.b32.xlu0 %v590_v7, %s1065_s3  ;;  %v1287_v8 = vsel %vm780_vm13, %v779_v31, %v760_v6 }
0x1020   :  { %v592_v9 = vpop.permute.xlu0 %591 }
0x1021   :  { %949 = vmatmul.msk.f32.vlgmr.msra.gmra.mxu1 %vm136_vm12, %v592_v9 }
0x109e   :  { %v612_v11 = vpop.f32.mrf.mxu1 }
0x109f   :  { %v615_v12 = vadd.f32 %v612_v11, %v125_v10 }
0x10a1   :  { %1017 = vtanh.f32 %v615_v12  ;;  %v950_v15 = vmul.f32 -1.442695, %v615_v12 }
0x10a3   :  { %1019 = vpow2.f32 %v950_v15 }
0x10a7   :  { %v1018_v13 = vpop.eup %1017 }
0x10a8   :  { %638 = vrot.lane.b32.xlu1 %v1018_v13, %s1064_s24 }
0x10a9   :  { %v1020_v16 = vpop.eup %1019 }
0x10aa   :  { %v619_v17 = vadd.f32 1.0, %v1020_v16 }
0x10ac   :  { %1021 = vrcp.f32 %v619_v17  ;;  %v631_v24 = vand.u32 2147483648, %v619_v17  ;;  %vm625_vm15 = vweird.f32 %v619_v17  ;;  %v629_v14 = vand.u32 2147483647, %v619_v17 }
0x10ae   :  { %v632_v27 = vor.u32 1.1754944e-38, %v631_v24  ;;  %vm630_vm7 = vcmp.eq.f32.partialorder %v629_v14, 8.507059e+37 }
0x10b2   :  { %v1022_v18 = vpop.eup %1021 }
0x10b3   :  { %v621_v19 = vmul.f32 %v1022_v18, %v619_v17  ;;  %vm626_vm14 = vweird.f32 %v1022_v18 }
0x10b4   :  { %vm627_vm3 = vmor %vm625_vm15, %vm626_vm14 }
0x10b5   :  { %v622_v20 = vsub.f32 1.0, %v621_v19 }
0x10b7   :  { %v623_v21 = vmul.f32 %v1022_v18, %v622_v20 }
0x10b9   :  { %v624_v22 = vadd.f32 %v1022_v18, %v623_v21 }
0x10bb   :  { %v628_v25 = vsel %vm627_vm3, %v1022_v18, %v624_v22 }
0x10bc   :  { %v633_v3 = vsel %vm630_vm7, %v632_v27, %v628_v25 }
0x10bd   :  { %v636_v29 = vmul.f32 %v633_v3, %v581_v53  ;;  %v789_v53 = vld [vmem:[%s1362_s6 + $0x18] sm:$0xff] }
0x10be   :  { %816 = vmatpush.msrb.mxu2 %v789_v53 }
0x10c0   :  { %817 = vmatpush.msrb.mxu2 %v788_v54 }
0x10c2   :  { %818 = vmatpush.msrb.mxu2 %v787_v55 }
0x10c4   :  { %819 = vmatpush.msrb.mxu2 %v786_v56 }
0x111a   :  { %v639_v23 = vpop.permute.xlu1 %638 }
0x111b   :  { %v641_v28 = vmul.f32 %v639_v23, %v633_v3 }
0x111d   :  { %643 = vrot.lane.b32.xlu2 %v641_v28, %s1065_s3 }
0x1177   :  { %v644_v30 = vpop.permute.xlu2 %643 }
0x1178   :  { %v646_v31 = vadd.f32 %v644_v30, %v636_v29 }
0x117a   :  { %1023 = vtanh.f32 %v646_v31 }
0x1180   :  { %v1024_v32 = vpop.eup %1023 }
0x1181   :  { %649 = vrot.lane.b32.xlu0 %v1024_v32, %s1064_s24 }
0x11f3   :  { %v650_v37 = vpop.permute.xlu0 %649 }
0x11f4   :  { %v652_v38 = vmul.f32 %v650_v37, %v633_v3 }
0x11f6   :  { %862 = vst [vmem:[#allocation1] ss:$4 sm:$0xff] %v652_v38  ;;  %v729_v39 = vrot.slane %v652_v38, 1  ;;  %v730_v40 = vrot.slane %v652_v38, 2  ;;  %v731_v41 = vrot.slane %v652_v38, 3 }
0x11f8   :  { %v732_v42 = vsel %vm656_vm4, %v652_v38, %v729_v39  ;;  %v733_v43 = vsel %vm59_vm1, %v730_v40, %v731_v41  ;;  %v735_v44 = vsel %vm56_vm0, %v652_v38, %v729_v39  ;;  %v736_v45 = vsel %vm62_vm2, %v730_v40, %v731_v41 }
0x11f9   :  { %v734_v46 = vsel %vm659_vm6, %v732_v42, %v733_v43  ;;  %v737_v47 = vsel %vm663_vm5, %v735_v44, %v736_v45  ;;  %vm888_vm0 = vcmask 33792   ;;  %vm827_vm1 = vcmask 23552  }
0x11fa   :  { %v763_v48 = vperm.slane %v734_v46, 0  ;;  %v738_v49 = vrot.slane %v737_v47, 1 }
0x11fc   :  { %v784_v26 = vsel %vm783_vm8, %v1284_v5, %v763_v48  ;;  %v764_v50 = vperm.slane %v738_v49, 0 }
0x11fd   :  { %796 = vrot.lane.b32.xlu1 %v784_v26, %s1065_s3  ;;  %v863_v51 = vld.sshfl [vmem:[#allocation1] sm:$0xff pattern:$0x73625140] }
0x11fe   :  { %864 = vrot.lane.b32.xlu2 %v863_v51, %s1065_s3  ;;  %v785_v52 = vsel %vm783_vm8, %v1287_v8, %v764_v50 }
0x11ff   :  { %798 = vrot.lane.b32.xlu0 %v785_v52, %s1065_s3 }
0x1258   :  { %v865_v57 = vpop.permute.xlu2 %864 }
0x1259   :  { %953 = vmatmul.msk.f32.vlgmr.msra.gmra.mxu3 %vm136_vm12, %v865_v57 }
0x126f   :  { %v797_v58 = vpop.permute.xlu1 %796 }
0x1270   :  { %951 = vmatmul.msk.f32.vlgmr.msrb.gmra.mxu2 %vm136_vm12, %v797_v58 }
0x1271   :  { %v799_v59 = vpop.permute.xlu0 %798 }
0x1278   :  { %952 = vmatmul.msk.f32.gmra.mxu2 %vm136_vm12, %v799_v59 }
0x12dc   :  { %v885_v61 = vpop.f32.mrf.mxu3 }
0x12dd   :  { %v886_v62 = vadd.f32 %v959_v60, %v885_v61 }
0x12df   :  { %v889_v63 = vsel %vm888_vm0, %v886_v62, -inf }
0x12e0   :  { %890 = vmax.xlane.f32.xlu1 %v889_v63 }
0x12f3   :  { %v821_v1 = vpop.f32.mrf.mxu2 }
0x12f4   :  { %v822_v2 = vadd.f32 %v960_v0, %v821_v1 }
0x12f6   :  { %v828_v4 = vsel %vm827_vm1, %v822_v2, -inf }
0x12f7   :  { %829 = vmax.xlane.f32.xlu2 %v828_v4 }
0x12fb   :  { %v824_v5 = vpop.f32.mrf.mxu2 }
0x12fc   :  { %v825_v6 = vadd.f32 %v960_v0, %v824_v5 }
0x12fe   :  { %v831_v7 = vsel %vm827_vm1, %v825_v6, -inf }
0x12ff   :  { %832 = vmax.xlane.f32.xlu0 %v831_v7 }
0x1353   :  { %v891_v8 = vpop.xlane.xlu1 %890 }
0x1354   :  { %v892_v9 = vsub.f32 %v886_v62, %v891_v8 }
0x1356   :  { %v893_v10 = vmul.f32 1.442695, %v892_v9 }
0x1358   :  { %1025 = vpow2.f32 %v893_v10 }
0x135e   :  { %v1026_v11 = vpop.eup %1025 }
0x135f   :  { %v895_v12 = vsel %vm888_vm0, %v1026_v11, 0.0 }
0x1360   :  { %896 = vadd.xlane.f32.xlu2 %v895_v12 }
0x136a   :  { %v830_v13 = vpop.xlane.xlu2 %829 }
0x136b   :  { %v834_v15 = vsub.f32 %v822_v2, %v830_v13 }
0x136d   :  { %v836_v16 = vmul.f32 1.442695, %v834_v15 }
0x136f   :  { %1027 = vpow2.f32 %v836_v16 }
0x1372   :  { %v833_v17 = vpop.xlane.xlu0 %832 }
0x1373   :  { %v835_v18 = vsub.f32 %v825_v6, %v833_v17 }
0x1375   :  { %v1028_v19 = vpop.eup %1027  ;;  %v838_v20 = vmul.f32 1.442695, %v835_v18 }
0x1376   :  { %v840_v21 = vsel %vm827_vm1, %v1028_v19, 0.0 }
0x1377   :  { %1029 = vpow2.f32 %v838_v20  ;;  %841 = vadd.xlane.f32.xlu1 %v840_v21 }
0x137d   :  { %v1030_v22 = vpop.eup %1029 }
0x137e   :  { %v843_v24 = vsel %vm827_vm1, %v1030_v22, 0.0 }
0x137f   :  { %844 = vadd.xlane.f32.xlu2 %v843_v24 }
0x13d3   :  { %v897_v14 = vpop.xlane.xlu2 %896 }
0x13d4   :  { %1031 = vlog2.f32 %v897_v14 }
0x13da   :  { %v1032_v25 = vpop.eup %1031 }
0x13db   :  { %v899_v27 = vmul.f32 0.6931472, %v1032_v25 }
0x13dd   :  { %v900_v23 = vsub.f32 %v892_v9, %v899_v27 }
0x13df   :  { %901 = vst.msk [vmem:[#allocation2] sm:$0x3] %vm888_vm0, %v900_v23 }
0x13e0   :  { %912 = dma.vmem_to_hbm [thread:$0]  %s908_s7, 32, %s910_s23, [#allocation3]  }
0x13ea   :  { %v842_v3 = vpop.xlane.xlu1 %841 }
0x13eb   :  { %1033 = vlog2.f32 %v842_v3 }
0x13f1   :  { %v1034_v28 = vpop.eup %1033 }
0x13f2   :  { %v847_v29 = vmul.f32 0.6931472, %v1034_v28  ;;  %v845_v30 = vpop.xlane.xlu2 %844 }
0x13f3   :  { %1035 = vlog2.f32 %v845_v30 }
0x13f4   :  { %v850_v31 = vsub.f32 %v834_v15, %v847_v29 }
0x13f6   :  { %852 = vst.msk [vmem:[%s1365_s9] sm:$0xff] %vm827_vm1, %v850_v31 }
0x13f9   :  { %v1036_v32 = vpop.eup %1035 }
0x13fa   :  { %v849_v33 = vmul.f32 0.6931472, %v1036_v32 }
0x13fc   :  { %v851_v34 = vsub.f32 %v835_v18, %v849_v33 }
0x13fe   :  { %853 = vst.msk [vmem:[%s1365_s9 + $0x8] sm:$0xff] %vm827_vm1, %v851_v34 }
0x13ff   :  { %1061 = dma.done.wait [#allocation3], 32  }
0x1400   :  { %1062 = vsyncadd [#allocation3], 4294967264 }
0x1401   :  { %921 = vsyncpa [#allocation3], 1 }

</bundles_post_ra>
